<compile_context>
chip_gen: v6e
topology: v6e:2x2x1
jax: 0.10.0
libtpu: 0.0.40
codegen_flags: <defaults>
</compile_context>

<pallas_src>
import jax
import jax.numpy as jnp
from jax.experimental import pallas as pl
from jax.experimental.pallas import tpu as pltpu

# Logical (PyTorch) dims
D_IN, D1, D2, D3, D_OUT = 784, 512, 256, 128, 64
# Lane-dense padded output width (avoids masked vst.msk on the final store).
D_OUT_PAD = 128
TB_MAX = 512  # max batch tile (MXU M dim); multiple of 128


def _round_up(v, m):
    return ((v + m - 1) // m) * m


def encoder_kernel(x_ref,
                   w1_ref, b1_ref,
                   w2_ref, b2_ref,
                   w3_ref, b3_ref,
                   w4_ref, b4_ref,
                   o_ref):
    # Fused 4-layer MLP: (TB,784)->(TB,512)->(TB,256)->(TB,128)->(TB,128).
    # Matmul operands bf16, accumulation + elementwise epilogue in f32.
    x = x_ref[...].astype(jnp.bfloat16)   # cast in-kernel; no host pre-pass
    h = jnp.dot(x, w1_ref[...], preferred_element_type=jnp.float32)
    h = jnp.maximum(h + b1_ref[...], 0.0)
    h = jnp.dot(h.astype(jnp.bfloat16), w2_ref[...],
                preferred_element_type=jnp.float32)
    h = jnp.maximum(h + b2_ref[...], 0.0)
    h = jnp.dot(h.astype(jnp.bfloat16), w3_ref[...],
                preferred_element_type=jnp.float32)
    h = jnp.maximum(h + b3_ref[...], 0.0)
    h = jnp.dot(h.astype(jnp.bfloat16), w4_ref[...],
                preferred_element_type=jnp.float32)
    o_ref[...] = (h + b4_ref[...]).astype(o_ref.dtype)


def _pick_tile(B):
    """Batch tile: big tiles at large B, >=2 grid steps when B>=256 (v7x 2 TCs),
    16-aligned single tile for small B (bf16 sublane packing)."""
    if B >= 2 * TB_MAX:
        return TB_MAX
    if B >= 256:
        # floor(B/2) rounded down to 128 -> guarantees grid >= 2 steps
        return min(TB_MAX, max(128, (B // 256) * 128))
    return max(16, _round_up(B, 16))


def encoder_forward_padded(x, packed_params):
    """x: (B, 784) float32. Returns the padded (b_pad, 128) f32 kernel output
    (valid region is [:B, :64]); use this directly to let a downstream consumer
    fuse the slice instead of paying an extra read+write."""
    (w1, b1), (w2, b2), (w3, b3), (w4, b4) = packed_params
    B = x.shape[0]

    tb = _pick_tile(B)
    b_pad = _round_up(B, tb)
    if b_pad != B:
        # Row-only zero pad (no dtype change); skipped entirely when B is
        # already tile-aligned (the common case for training batch sizes).
        x = jnp.pad(x, ((0, b_pad - B), (0, 0)))

    def w_spec(shape):
        # Whole weight/bias resident in VMEM; constant block index across the
        # grid. (Could be single-buffered via pipeline_mode to save ~1.2 MB,
        # but default double-buffering fits comfortably even at TB=512.)
        return pl.BlockSpec(shape, lambda i: (0, 0))

    grid_spec = pltpu.PrefetchScalarGridSpec(
        num_scalar_prefetch=0,
        grid=(b_pad // tb,),
        in_specs=[
            pl.BlockSpec((tb, D_IN), lambda i: (i, 0)),   # f32 input, K=784
            w_spec((D_IN, D1)), w_spec((1, D1)),
            w_spec((D1, D2)), w_spec((1, D2)),
            w_spec((D2, D3)), w_spec((1, D3)),
            w_spec((D3, D_OUT_PAD)), w_spec((1, D_OUT_PAD)),
        ],
        out_specs=pl.BlockSpec((tb, D_OUT_PAD), lambda i: (i, 0)),
    )

    flops = 2 * b_pad * (D_IN * D1 + D1 * D2 + D2 * D3 + D3 * D_OUT_PAD)
    weight_bytes = (2 * (D_IN * D1 + D1 * D2 + D2 * D3 + D3 * D_OUT_PAD)
                    + 4 * (D1 + D2 + D3 + D_OUT_PAD))
    bytes_accessed = weight_bytes + b_pad * (4 * D_IN + 4 * D_OUT_PAD)

    out = pl.pallas_call(
        encoder_kernel,
        out_shape=jax.ShapeDtypeStruct((b_pad, D_OUT_PAD), jnp.float32),
        grid_spec=grid_spec,
        compiler_params=pltpu.CompilerParams(
            dimension_semantics=("parallel",),
            vmem_limit_bytes=32 * 1024 * 1024),
        cost_estimate=pl.CostEstimate(
            flops=flops, transcendentals=0, bytes_accessed=bytes_accessed),
    )(x, w1, b1, w2, b2, w3, b3, w4, b4)
    return out


def encoder_forward(x, packed_params):
    """x: (B, 784) float32 -> (B, 64) float32 (PyTorch Encoder semantics)."""
    B = x.shape[0]
    out = encoder_forward_padded(x, packed_params)
    # NOTE: this slice is an extra copy; fused consumers should use
    # encoder_forward_padded and slice/fuse downstream.
    return out[:B, :D_OUT]


def init_params(key):
    # Deterministic init mimicking torch's default Linear init
    # (uniform in [-1/sqrt(fan_in), 1/sqrt(fan_in)]). Logical f32 shapes,
    # weights stored transposed vs torch ((in, out)) so the kernel does x@W+b.
    dims = [(D_IN, D1), (D1, D2), (D2, D3), (D3, D_OUT)]
    params = []
    for fan_in, fan_out in dims:
        key, kw, kb = jax.random.split(key, 3)
        bound = 1.0 / jnp.sqrt(fan_in)
        w = jax.random.uniform(kw, (fan_in, fan_out), jnp.float32,
                               minval=-bound, maxval=bound)
        b = jax.random.uniform(kb, (1, fan_out), jnp.float32,
                               minval=-bound, maxval=bound)
        params.append((w, b))
    return params


def pack_params(params):
    # Cast weights to bf16 (MXU-native); biases stay f32.
    # Only the last layer's N is padded 64->128 for a lane-dense output store.
    (w1, b1), (w2, b2), (w3, b3), (w4, b4) = params
    w4p = jnp.pad(w4, ((0, 0), (0, D_OUT_PAD - D_OUT))).astype(jnp.bfloat16)
    b4p = jnp.pad(b4, ((0, 0), (0, D_OUT_PAD - D_OUT)))
    return ((w1.astype(jnp.bfloat16), b1),
            (w2.astype(jnp.bfloat16), b2),
            (w3.astype(jnp.bfloat16), b3),
            (w4p, b4p))


def reference_forward(x, params):
    # Mirrors the kernel's numerics: bf16 matmul operands, f32 accumulation,
    # f32 bias-add / ReLU.
    # TODO(synk): strict-parity PyTorch uses pure f32 matmuls; bf16 operands
    # are an intentional MXU-friendly deviation (tolerance 2e-2).
    h = x
    for li, (w, b) in enumerate(params):
        h = jnp.dot(h.astype(jnp.bfloat16), w.astype(jnp.bfloat16),
                    preferred_element_type=jnp.float32) + b
        if li < len(params) - 1:
            h = jnp.maximum(h, 0.0)
    return h


if __name__ == "__main__":
    key = jax.random.PRNGKey(0)
    key, kx_small, kx_big = jax.random.split(key, 3)

    params = init_params(key)
    packed = pack_params(params)

    # Small batch (single 16-row tile) and larger batch (2-step tiled path).
    for B, kx in ((4, kx_small), (512, kx_big)):
        x = jax.random.normal(kx, (B, D_IN), jnp.float32)
        out = jax.block_until_ready(encoder_forward(x, packed))
        ref = reference_forward(x, params)
        assert out.shape == (B, D_OUT)
        max_err = jnp.max(jnp.abs(out - ref))
        assert jnp.allclose(out, ref, atol=2e-2, rtol=2e-2), \
            f"B={B} max err {max_err}"

    print("KERNEL_OK")
</pallas_src>

<mosaic_0001>
module attributes {stable_mosaic.version = 11 : i64} {
  func.func @encoder_kernel(%arg0: i32, %arg1: memref<16x784xf32, #tpu.memory_space<vmem>>, %arg2: memref<784x512xbf16, #tpu.memory_space<vmem>>, %arg3: memref<1x512xf32, #tpu.memory_space<vmem>>, %arg4: memref<512x256xbf16, #tpu.memory_space<vmem>>, %arg5: memref<1x256xf32, #tpu.memory_space<vmem>>, %arg6: memref<256x128xbf16, #tpu.memory_space<vmem>>, %arg7: memref<1x128xf32, #tpu.memory_space<vmem>>, %arg8: memref<128x128xbf16, #tpu.memory_space<vmem>>, %arg9: memref<1x128xf32, #tpu.memory_space<vmem>>, %arg10: memref<16x128xf32, #tpu.memory_space<vmem>>) attributes {dimension_semantics = [#tpu.dimension_semantics<parallel>], iteration_bounds = array<i64: 1>, scalar_prefetch = 0 : i64, scratch_operands = 0 : i64, tpu.core_type = #tpu.core_type<tc>, window_params = [{transform_indices = @transform_0, window_bounds = array<i64: 16, 784>}, {pipeline_mode = #tpu.pipeline_mode<synchronous>, transform_indices = @transform_1, window_bounds = array<i64: 784, 512>}, {pipeline_mode = #tpu.pipeline_mode<synchronous>, transform_indices = @transform_2, window_bounds = array<i64: 1, 512>}, {pipeline_mode = #tpu.pipeline_mode<synchronous>, transform_indices = @transform_3, window_bounds = array<i64: 512, 256>}, {pipeline_mode = #tpu.pipeline_mode<synchronous>, transform_indices = @transform_4, window_bounds = array<i64: 1, 256>}, {pipeline_mode = #tpu.pipeline_mode<synchronous>, transform_indices = @transform_5, window_bounds = array<i64: 256, 128>}, {pipeline_mode = #tpu.pipeline_mode<synchronous>, transform_indices = @transform_6, window_bounds = array<i64: 1, 128>}, {pipeline_mode = #tpu.pipeline_mode<synchronous>, transform_indices = @transform_7, window_bounds = array<i64: 128, 128>}, {pipeline_mode = #tpu.pipeline_mode<synchronous>, transform_indices = @transform_8, window_bounds = array<i64: 1, 128>}, {transform_indices = @transform_9, window_bounds = array<i64: 16, 128>}]} {
    %c0 = arith.constant 0 : index
    %c0_0 = arith.constant 0 : index
    %0 = vector.load %arg1[%c0, %c0_0] : memref<16x784xf32, #tpu.memory_space<vmem>>, vector<16x784xf32>
    %1 = arith.truncf %0 : vector<16x784xf32> to vector<16x784xbf16>
    %c0_1 = arith.constant 0 : index
    %c0_2 = arith.constant 0 : index
    %2 = vector.load %arg2[%c0_1, %c0_2] : memref<784x512xbf16, #tpu.memory_space<vmem>>, vector<784x512xbf16>
    %cst = arith.constant dense<0.000000e+00> : vector<16x512xf32>
    %3 = tpu.matmul %1, %2, %cst {dimension_numbers = #tpu.dot_dimension_numbers<[1], [0], [0], [1], [0, 0, 1, 1], [], []>} : vector<16x784xbf16>, vector<784x512xbf16>, vector<16x512xf32> -> vector<16x512xf32>
    %c0_3 = arith.constant 0 : index
    %c0_4 = arith.constant 0 : index
    %4 = vector.load %arg3[%c0_3, %c0_4] : memref<1x512xf32, #tpu.memory_space<vmem>>, vector<1x512xf32>
    %5 = vector.broadcast %4 : vector<1x512xf32> to vector<16x512xf32>
    %6 = arith.addf %3, %5 : vector<16x512xf32>
    %cst_5 = arith.constant 0.000000e+00 : f32
    %7 = vector.broadcast %cst_5 : f32 to vector<16x512xf32>
    %8 = arith.maximumf %6, %7 : vector<16x512xf32>
    %9 = arith.truncf %8 : vector<16x512xf32> to vector<16x512xbf16>
    %c0_6 = arith.constant 0 : index
    %c0_7 = arith.constant 0 : index
    %10 = vector.load %arg4[%c0_6, %c0_7] : memref<512x256xbf16, #tpu.memory_space<vmem>>, vector<512x256xbf16>
    %cst_8 = arith.constant dense<0.000000e+00> : vector<16x256xf32>
    %11 = tpu.matmul %9, %10, %cst_8 {dimension_numbers = #tpu.dot_dimension_numbers<[1], [0], [0], [1], [0, 0, 1, 1], [], []>} : vector<16x512xbf16>, vector<512x256xbf16>, vector<16x256xf32> -> vector<16x256xf32>
    %c0_9 = arith.constant 0 : index
    %c0_10 = arith.constant 0 : index
    %12 = vector.load %arg5[%c0_9, %c0_10] : memref<1x256xf32, #tpu.memory_space<vmem>>, vector<1x256xf32>
    %13 = vector.broadcast %12 : vector<1x256xf32> to vector<16x256xf32>
    %14 = arith.addf %11, %13 : vector<16x256xf32>
    %cst_11 = arith.constant 0.000000e+00 : f32
    %15 = vector.broadcast %cst_11 : f32 to vector<16x256xf32>
    %16 = arith.maximumf %14, %15 : vector<16x256xf32>
    %17 = arith.truncf %16 : vector<16x256xf32> to vector<16x256xbf16>
    %c0_12 = arith.constant 0 : index
    %c0_13 = arith.constant 0 : index
    %18 = vector.load %arg6[%c0_12, %c0_13] : memref<256x128xbf16, #tpu.memory_space<vmem>>, vector<256x128xbf16>
    %cst_14 = arith.constant dense<0.000000e+00> : vector<16x128xf32>
    %19 = tpu.matmul %17, %18, %cst_14 {dimension_numbers = #tpu.dot_dimension_numbers<[1], [0], [0], [1], [0, 0, 1, 1], [], []>} : vector<16x256xbf16>, vector<256x128xbf16>, vector<16x128xf32> -> vector<16x128xf32>
    %c0_15 = arith.constant 0 : index
    %c0_16 = arith.constant 0 : index
    %20 = vector.load %arg7[%c0_15, %c0_16] : memref<1x128xf32, #tpu.memory_space<vmem>>, vector<1x128xf32>
    %21 = vector.broadcast %20 : vector<1x128xf32> to vector<16x128xf32>
    %22 = arith.addf %19, %21 : vector<16x128xf32>
    %cst_17 = arith.constant 0.000000e+00 : f32
    %23 = vector.broadcast %cst_17 : f32 to vector<16x128xf32>
    %24 = arith.maximumf %22, %23 : vector<16x128xf32>
    %25 = arith.truncf %24 : vector<16x128xf32> to vector<16x128xbf16>
    %c0_18 = arith.constant 0 : index
    %c0_19 = arith.constant 0 : index
    %26 = vector.load %arg8[%c0_18, %c0_19] : memref<128x128xbf16, #tpu.memory_space<vmem>>, vector<128x128xbf16>
    %cst_20 = arith.constant dense<0.000000e+00> : vector<16x128xf32>
    %27 = tpu.matmul %25, %26, %cst_20 {dimension_numbers = #tpu.dot_dimension_numbers<[1], [0], [0], [1], [0, 0, 1, 1], [], []>} : vector<16x128xbf16>, vector<128x128xbf16>, vector<16x128xf32> -> vector<16x128xf32>
    %c0_21 = arith.constant 0 : index
    %c0_22 = arith.constant 0 : index
    %28 = vector.load %arg9[%c0_21, %c0_22] : memref<1x128xf32, #tpu.memory_space<vmem>>, vector<1x128xf32>
    %29 = vector.broadcast %28 : vector<1x128xf32> to vector<16x128xf32>
    %30 = arith.addf %27, %29 : vector<16x128xf32>
    %c0_23 = arith.constant 0 : index
    %c0_24 = arith.constant 0 : index
    %31 = vector.load %arg10[%c0_23, %c0_24] : memref<16x128xf32, #tpu.memory_space<vmem>>, vector<16x128xf32>
    tpu.vector_store %arg10[%c0_23, %c0_24], %30 {strides = array<i32>} : memref<16x128xf32, #tpu.memory_space<vmem>>, vector<16x128xf32>,
    return
  }
  func.func @transform_0(%arg0: i32) -> (i32, i32) {
    %c0_i32 = arith.constant 0 : i32
    %c0_i32_0 = arith.constant 0 : i32
    return %arg0, %c0_i32 : i32, i32
  }
  func.func @transform_1(%arg0: i32) -> (i32, i32) {
    %c0_i32 = arith.constant 0 : i32
    %c0_i32_0 = arith.constant 0 : i32
    %c0_i32_1 = arith.constant 0 : i32
    return %c0_i32, %c0_i32_0 : i32, i32
  }
  func.func @transform_2(%arg0: i32) -> (i32, i32) {
    %c0_i32 = arith.constant 0 : i32
    %c0_i32_0 = arith.constant 0 : i32
    %c0_i32_1 = arith.constant 0 : i32
    return %c0_i32, %c0_i32_0 : i32, i32
  }
  func.func @transform_3(%arg0: i32) -> (i32, i32) {
    %c0_i32 = arith.constant 0 : i32
    %c0_i32_0 = arith.constant 0 : i32
    %c0_i32_1 = arith.constant 0 : i32
    return %c0_i32, %c0_i32_0 : i32, i32
  }
  func.func @transform_4(%arg0: i32) -> (i32, i32) {
    %c0_i32 = arith.constant 0 : i32
    %c0_i32_0 = arith.constant 0 : i32
    %c0_i32_1 = arith.constant 0 : i32
    return %c0_i32, %c0_i32_0 : i32, i32
  }
  func.func @transform_5(%arg0: i32) -> (i32, i32) {
    %c0_i32 = arith.constant 0 : i32
    %c0_i32_0 = arith.constant 0 : i32
    %c0_i32_1 = arith.constant 0 : i32
    return %c0_i32, %c0_i32_0 : i32, i32
  }
  func.func @transform_6(%arg0: i32) -> (i32, i32) {
    %c0_i32 = arith.constant 0 : i32
    %c0_i32_0 = arith.constant 0 : i32
    %c0_i32_1 = arith.constant 0 : i32
    return %c0_i32, %c0_i32_0 : i32, i32
  }
  func.func @transform_7(%arg0: i32) -> (i32, i32) {
    %c0_i32 = arith.constant 0 : i32
    %c0_i32_0 = arith.constant 0 : i32
    %c0_i32_1 = arith.constant 0 : i32
    return %c0_i32, %c0_i32_0 : i32, i32
  }
  func.func @transform_8(%arg0: i32) -> (i32, i32) {
    %c0_i32 = arith.constant 0 : i32
    %c0_i32_0 = arith.constant 0 : i32
    %c0_i32_1 = arith.constant 0 : i32
    return %c0_i32, %c0_i32_0 : i32, i32
  }
  func.func @transform_9(%arg0: i32) -> (i32, i32) {
    %c0_i32 = arith.constant 0 : i32
    %c0_i32_0 = arith.constant 0 : i32
    return %arg0, %c0_i32 : i32, i32
  }
}

</mosaic_0001>

<bundles_post_ra>
// kernel: tpu_custom_call.1
= control target key start
LH: loop header
LB: loop body
LE: loop exit
PB: predicated region body
PF: predicated region fallthrough
CT: control target
= control target key end

     0   :  { %14 = vsyncpa [#allocation3], 0  ;;  %s3565_s0 = inlined_call_operand.hbm [shape: f32[16,784], index: 0, kind: input, shape index: {}]   ;;  %s3566_s1 = inlined_call_operand.hbm [shape: bf16[784,512], index: 1, kind: input, shape index: {}]   ;;  %s3567_s2 = inlined_call_operand.hbm [shape: f32[1,512], index: 2, kind: input, shape index: {}]   ;;  %s3568_s3 = inlined_call_operand.hbm [shape: bf16[512,256], index: 3, kind: input, shape index: {}]   ;;  %s3569_s4 = inlined_call_operand.vmem [shape: f32[1,256], index: 4, kind: input, shape index: {}]   ;;  %s3570_s5 = inlined_call_operand.hbm [shape: bf16[256,128], index: 5, kind: input, shape index: {}]   ;;  %s3571_s6 = inlined_call_operand.vmem [shape: f32[1,128], index: 6, kind: input, shape index: {}]   ;;  %s3572_s7 = inlined_call_operand.hbm [shape: bf16[128,128], index: 7, kind: input, shape index: {}]   ;;  %s3573_s8 = inlined_call_operand.vmem [shape: f32[1,128], index: 8, kind: input, shape index: {}]   ;;  %s3574_s9 = inlined_call_operand.hbm [shape: f32[16,128], index: 9, kind: output, shape index: {}]  }
   0x1   :  { %15 = vsyncpa [#allocation6], 0 }
   0x2   :  { %16 = vsyncpa [#allocation9], 0 }
   0x3   :  { %17 = vsyncpa [#allocation12], 0 }
   0x4   :  { %18 = vsyncpa [#allocation4], 0  ;;  %s3415_s30 = smov [#allocation5]  }
   0x5   :  { %s36_s10 = sshll.u32 %s3415_s30, 4  ;;  %s37_s10 = int_to_ptr.vmem [resolvable:$true] %s36_s10 }
   0x6   :  { %s3273_s11 = scalar_lea.vmem %s37_s10, 25088  ;;  %p3278_p1 = scmp.lt.s32.totalorder %s37_s10, %s37_s10 }
   0x7   :  { %p3274_p0 = scmp.ne.s32.totalorder %s37_s10, %s3273_s11  ;;  %p3279_p2 = scmp.lt.s32.totalorder %s3273_s11, %s3273_s11 }
   0x9   :  { %p3280_p3 = por %p3279_p2, %p3278_p1 }
   0xb   :  { %p3281_p4 = pnand %p3280_p3, %p3274_p0 }
   0xd   :  { %3284 = shalt.err (!%p3281_p4)
}
   0xe   :  { %s3416_s12 = smov 256   ;;  %s3417_s13 = smov 16  }
   0xf   :  { %42 = dma.hbm_to_vmem [thread:$0]  %s3566_s1, 25088, %s37_s10, [#allocation6], %s3416_s12, %s3416_s12, %s3417_s13  }
  0x10   :  { %s3418_s16 = smov [#allocation8]  }
  0x11   :  { %s58_s17 = sshll.u32 %s3418_s16, 4  ;;  %s59_s17 = int_to_ptr.vmem [resolvable:$true] %s58_s17 }
  0x12   :  { %s3293_s18 = scalar_lea.vmem %s59_s17, 8192  ;;  %p3298_p6 = scmp.lt.s32.totalorder %s59_s17, %s59_s17 }
  0x13   :  { %p3294_p5 = scmp.ne.s32.totalorder %s59_s17, %s3293_s18  ;;  %p3299_p7 = scmp.lt.s32.totalorder %s3293_s18, %s3293_s18 }
  0x15   :  { %p3300_p8 = por %p3299_p7, %p3298_p6 }
  0x17   :  { %p3301_p9 = pnand %p3300_p8, %p3294_p5 }
  0x19   :  { %3304 = shalt.err (!%p3301_p9)
}
  0x1a   :  { %s3419_s19 = smov 128   ;;  %s3420_s20 = smov 8  }
  0x1b   :  { %64 = dma.hbm_to_vmem [thread:$0]  %s3568_s3, 8192, %s59_s17, [#allocation9], %s3419_s19, %s3419_s19, %s3420_s20  }
  0x1c   :  { %s3421_s1 = smov [#allocation2]  }
  0x1d   :  { %s24_s23 = sshll.u32 %s3421_s1, 4  ;;  %s25_s23 = int_to_ptr.vmem [resolvable:$true] %s24_s23 }
  0x1e   :  { %s3313_s24 = scalar_lea.vmem %s25_s23, 1792  ;;  %p3318_p11 = scmp.lt.s32.totalorder %s25_s23, %s25_s23 }
  0x1f   :  { %p3314_p10 = scmp.ne.s32.totalorder %s25_s23, %s3313_s24  ;;  %p3319_p12 = scmp.lt.s32.totalorder %s3313_s24, %s3313_s24 }
  0x21   :  { %p3320_p13 = por %p3319_p12, %p3318_p11 }
  0x23   :  { %p3321_p0 = pnand %p3320_p13, %p3314_p10 }
  0x25   :  { %3324 = shalt.err (!%p3321_p0)
}
  0x26   :  { %s3422_s25 = smov 896   ;;  %s3423_s26 = smov 56  }
  0x27   :  { %30 = dma.hbm_to_vmem [thread:$0]  %s3565_s0, 1792, %s25_s23, [#allocation3], %s3422_s25, %s3422_s25, %s3423_s26  }
  0x28   :  { %s3424_s29 = smov [#allocation7]   ;;  %s3425_s3 = smov [#allocation10]  }
  0x29   :  { %s49_s30 = sshll.u32 %s3424_s29, 4  ;;  %s72_s10 = sshll.u32 %s3425_s3, 4  ;;  %s50_s30 = int_to_ptr.vmem [resolvable:$true] %s49_s30  ;;  %s73_s10 = int_to_ptr.vmem [resolvable:$true] %s72_s10 }
  0x2a   :  { %s3333_s11 = scalar_lea.vmem %s50_s30, 64  ;;  %p3338_p2 = scmp.lt.s32.totalorder %s50_s30, %s50_s30 }
  0x2b   :  { %p3334_p1 = scmp.ne.s32.totalorder %s50_s30, %s3333_s11  ;;  %p3339_p3 = scmp.lt.s32.totalorder %s3333_s11, %s3333_s11 }
  0x2d   :  { %p3340_p4 = por %p3339_p3, %p3338_p2 }
  0x2f   :  { %p3341_p5 = pnand %p3340_p4, %p3334_p1 }
  0x31   :  { %3344 = shalt.err (!%p3341_p5)
}
  0x32   :  { %52 = dma.hbm_to_vmem [thread:$0]  %s3567_s2, 64, %s50_s30, [#allocation6]  }
  0x33   :  { %s3353_s14 = scalar_lea.vmem %s73_s10, 2048  ;;  %p3358_p7 = scmp.lt.s32.totalorder %s73_s10, %s73_s10 }
  0x34   :  { %p3354_p6 = scmp.ne.s32.totalorder %s73_s10, %s3353_s14  ;;  %p3359_p8 = scmp.lt.s32.totalorder %s3353_s14, %s3353_s14 }
  0x36   :  { %p3360_p9 = por %p3359_p8, %p3358_p7 }
  0x38   :  { %p3361_p10 = pnand %p3360_p9, %p3354_p6 }
  0x3a   :  { %3364 = shalt.err (!%p3361_p10)
}
  0x3b   :  { %s3426_s0 = smov 64   ;;  %s3427_s15 = smov 4  }
  0x3c   :  { %78 = dma.hbm_to_vmem [thread:$0]  %s3570_s5, 2048, %s73_s10, [#allocation9], %s3426_s0, %s3426_s0, %s3427_s15  }
  0x3d   :  { %s3428_s18 = smov [#allocation11]  }
  0x3e   :  { %s86_s21 = sshll.u32 %s3428_s18, 4  ;;  %s87_s21 = int_to_ptr.vmem [resolvable:$true] %s86_s21 }
  0x3f   :  { %s3373_s22 = scalar_lea.vmem %s87_s21, 1024  ;;  %p3378_p12 = scmp.lt.s32.totalorder %s87_s21, %s87_s21 }
  0x40   :  { %p3374_p11 = scmp.ne.s32.totalorder %s87_s21, %s3373_s22  ;;  %p3379_p13 = scmp.lt.s32.totalorder %s3373_s22, %s3373_s22 }
  0x42   :  { %p3380_p0 = por %p3379_p13, %p3378_p12 }
  0x44   :  { %p3381_p1 = pnand %p3380_p0, %p3374_p11 }
  0x46   :  { %3384 = shalt.err (!%p3381_p1)
}
  0x47   :  { %92 = dma.hbm_to_vmem [thread:$0]  %s3572_s7, 1024, %s87_s21, [#allocation12], %s3426_s0, %s3426_s0, %s3427_s15  }
  0x48   :  { %3405 = dma.done.wait [#allocation3], 1792  }
  0x49   :  { %3406 = vsyncadd [#allocation3], 4294965504 }
  0x4a   :  { %3407 = dma.done.wait [#allocation6], 25152  }
  0x4b   :  { %3408 = vsyncadd [#allocation6], 4294942144 }
  0x4c   :  { %3409 = dma.done.wait [#allocation9], 10240  }
  0x4d   :  { %3410 = vsyncadd [#allocation9], 4294957056 }
  0x4e   :  { %3411 = dma.done.wait [#allocation12], 1024  }
  0x4f   :  { %3412 = vsyncadd [#allocation12], 4294966272  ;;  %v2851_v0 = vld [vmem:[#allocation5 + $0xe4] ss:$16 sps:$4 sm:$0xff]   ;;  %v2855_v2 = vld [vmem:[#allocation5 + $0xe0] ss:$16 sps:$4 sm:$0xff]  }
  0x50   :  { %v2853_v1 = vld [vmem:[#allocation5 + $0x2e4] ss:$16 sps:$4 sm:$0xff]   ;;  %1337 = vmatprep.subr.bf16.mxu0 %v2851_v0  ;;  %v2856_v3 = vld [vmem:[#allocation5 + $0x2e0] ss:$16 sps:$4 sm:$0xff]   ;;  %v115_v46 = vld [vmem:[#allocation2 + $0x8] sm:$0xff]  ;;  %vm1333_vm0 = vcmask 130048  }
  0x51   :  { %1380 = vmatprep.subr.bf16.mxu1 %v2853_v1  ;;  %v2857_v4 = vld [vmem:[#allocation5 + $0xc4] ss:$16 sps:$4 sm:$0xff]   ;;  %1338 = vmatpush1.bf16.msra.mxu0 %v2855_v2  ;;  %v2861_v6 = vld [vmem:[#allocation5 + $0xc0] ss:$16 sps:$4 sm:$0xff]   ;;  %v117_v48 = vld [vmem:[#allocation2 + $0x18] sm:$0xff]  ;;  %vm3431_vm1 = vmmov 0  }
  0x52   :  { %1381 = vmatpush1.bf16.msra.mxu1 %v2856_v3  ;;  %v2859_v5 = vld [vmem:[#allocation5 + $0x2c4] ss:$16 sps:$4 sm:$0xff]   ;;  %1339 = vmatprep.subr.bf16.mxu0 %v2857_v4  ;;  %v2862_v7 = vld [vmem:[#allocation5 + $0x2c0] ss:$16 sps:$4 sm:$0xff]   ;;  %s3432_s26 = smov [#allocation13]  }
  0x53   :  { %1382 = vmatprep.subr.bf16.mxu1 %v2859_v5  ;;  %v2863_v8 = vld [vmem:[#allocation5 + $0xa4] ss:$16 sps:$4 sm:$0xff]   ;;  %v2867_v10 = vld [vmem:[#allocation5 + $0xa0] ss:$16 sps:$4 sm:$0xff]   ;;  %s2479_s27 = sshll.u32 %s3432_s26, 4  ;;  %s2480_s27 = int_to_ptr.vmem [resolvable:$true] %s2479_s27 }
  0x54   :  { %v2865_v9 = vld [vmem:[#allocation5 + $0x2a4] ss:$16 sps:$4 sm:$0xff]   ;;  %v2868_v11 = vld [vmem:[#allocation5 + $0x2a0] ss:$16 sps:$4 sm:$0xff]   ;;  %p3390_p3 = scmp.lt.s32.totalorder %s2480_s27, %s2480_s27 }
  0x55   :  { %1340 = vmatpush1.bf16.msra.mxu0 %v2861_v6  ;;  %v2869_v12 = vld [vmem:[#allocation5 + $0x84] ss:$16 sps:$4 sm:$0xff]   ;;  %v2873_v14 = vld [vmem:[#allocation5 + $0x80] ss:$16 sps:$4 sm:$0xff]  }
  0x56   :  { %1383 = vmatpush1.bf16.msra.mxu1 %v2862_v7  ;;  %1341 = vmatprep.subr.bf16.mxu0 %v2863_v8  ;;  %v2871_v13 = vld [vmem:[#allocation5 + $0x284] ss:$16 sps:$4 sm:$0xff]   ;;  %v2874_v15 = vld [vmem:[#allocation5 + $0x280] ss:$16 sps:$4 sm:$0xff]   ;;  %v121_v7 = vld [vmem:[#allocation2 + $0x38] sm:$0xff] }
  0x57   :  { %1384 = vmatprep.subr.bf16.mxu1 %v2865_v9  ;;  %v2875_v16 = vld [vmem:[#allocation5 + $0x64] ss:$16 sps:$4 sm:$0xff]   ;;  %v2879_v18 = vld [vmem:[#allocation5 + $0x60] ss:$16 sps:$4 sm:$0xff]   ;;  %v123_v9 = vld [vmem:[#allocation2 + $0x48] sm:$0xff] }
  0x58   :  { %v2877_v17 = vld [vmem:[#allocation5 + $0x264] ss:$16 sps:$4 sm:$0xff]   ;;  %v2880_v19 = vld [vmem:[#allocation5 + $0x260] ss:$16 sps:$4 sm:$0xff]  }
  0x59   :  { %1342 = vmatpush1.bf16.msra.mxu0 %v2867_v10  ;;  %v2881_v20 = vld [vmem:[#allocation5 + $0x44] ss:$16 sps:$4 sm:$0xff]   ;;  %v2885_v22 = vld [vmem:[#allocation5 + $0x40] ss:$16 sps:$4 sm:$0xff]  }
  0x5a   :  { %1385 = vmatpush1.bf16.msra.mxu1 %v2868_v11  ;;  %1343 = vmatprep.subr.bf16.mxu0 %v2869_v12  ;;  %v2883_v21 = vld [vmem:[#allocation5 + $0x244] ss:$16 sps:$4 sm:$0xff]   ;;  %v2886_v23 = vld [vmem:[#allocation5 + $0x240] ss:$16 sps:$4 sm:$0xff]  }
  0x5b   :  { %1386 = vmatprep.subr.bf16.mxu1 %v2871_v13  ;;  %v2887_v24 = vld [vmem:[#allocation5 + $0x24] ss:$16 sps:$4 sm:$0xff]   ;;  %v2891_v26 = vld [vmem:[#allocation5 + $0x20] ss:$16 sps:$4 sm:$0xff]  }
  0x5c   :  { %v2889_v25 = vld [vmem:[#allocation5 + $0x224] ss:$16 sps:$4 sm:$0xff]   ;;  %v2892_v27 = vld [vmem:[#allocation5 + $0x220] ss:$16 sps:$4 sm:$0xff]  }
  0x5d   :  { %1344 = vmatpush1.bf16.msra.mxu0 %v2873_v14  ;;  %v2893_v28 = vld [vmem:[#allocation5 + $0x4] ss:$16 sps:$4 sm:$0xff]   ;;  %v2897_v30 = vld [vmem:[#allocation5] ss:$16 sps:$4 sm:$0xff]  }
  0x5e   :  { %1387 = vmatpush1.bf16.msra.mxu1 %v2874_v15  ;;  %1345 = vmatprep.subr.bf16.mxu0 %v2875_v16  ;;  %v2895_v29 = vld [vmem:[#allocation5 + $0x204] ss:$16 sps:$4 sm:$0xff]   ;;  %v2898_v31 = vld [vmem:[#allocation5 + $0x200] ss:$16 sps:$4 sm:$0xff]  }
  0x5f   :  { %1388 = vmatprep.subr.bf16.mxu1 %v2877_v17  ;;  %v2899_v32 = vld [vmem:[#allocation5 + $0x1e4] ss:$16 sps:$4 sm:$0xff]   ;;  %v2903_v34 = vld [vmem:[#allocation5 + $0x1e0] ss:$16 sps:$4 sm:$0xff]   ;;  %v2958_v17 = vld [vmem:[#allocation5 + $0xec] ss:$16 sps:$4 sm:$0xff]  }
  0x60   :  { %v2901_v33 = vld [vmem:[#allocation5 + $0x3e4] ss:$16 sps:$4 sm:$0xff]   ;;  %v2904_v35 = vld [vmem:[#allocation5 + $0x3e0] ss:$16 sps:$4 sm:$0xff]  }
  0x61   :  { %1346 = vmatpush1.bf16.msra.mxu0 %v2879_v18  ;;  %v2905_v36 = vld [vmem:[#allocation5 + $0x1c4] ss:$16 sps:$4 sm:$0xff]   ;;  %v2909_v38 = vld [vmem:[#allocation5 + $0x1c0] ss:$16 sps:$4 sm:$0xff]  }
  0x62   :  { %1389 = vmatpush1.bf16.msra.mxu1 %v2880_v19  ;;  %1347 = vmatprep.subr.bf16.mxu0 %v2881_v20  ;;  %v2907_v37 = vld [vmem:[#allocation5 + $0x3c4] ss:$16 sps:$4 sm:$0xff]   ;;  %v2910_v39 = vld [vmem:[#allocation5 + $0x3c0] ss:$16 sps:$4 sm:$0xff]   ;;  %v127_v20 = vld [vmem:[#allocation2 + $0x68] sm:$0xff] }
  0x63   :  { %1390 = vmatprep.subr.bf16.mxu1 %v2883_v21  ;;  %v2911_v40 = vld [vmem:[#allocation5 + $0x1a4] ss:$16 sps:$4 sm:$0xff]   ;;  %v2915_v42 = vld [vmem:[#allocation5 + $0x1a0] ss:$16 sps:$4 sm:$0xff]   ;;  %v3429_v21 = vmov 0  }
  0x64   :  { %v2913_v41 = vld [vmem:[#allocation5 + $0x3a4] ss:$16 sps:$4 sm:$0xff]   ;;  %v2916_v43 = vld [vmem:[#allocation5 + $0x3a0] ss:$16 sps:$4 sm:$0xff]  }
  0x65   :  { %1348 = vmatpush1.bf16.msra.mxu0 %v2885_v22  ;;  %v2917_v44 = vld [vmem:[#allocation5 + $0x184] ss:$16 sps:$4 sm:$0xff]   ;;  %v2921_v50 = vld [vmem:[#allocation5 + $0x180] ss:$16 sps:$4 sm:$0xff]  }
  0x66   :  { %1391 = vmatpush1.bf16.msra.mxu1 %v2886_v23  ;;  %1349 = vmatprep.subr.bf16.mxu0 %v2887_v24  ;;  %v2919_v45 = vld [vmem:[#allocation5 + $0x384] ss:$16 sps:$4 sm:$0xff]   ;;  %v2922_v51 = vld [vmem:[#allocation5 + $0x380] ss:$16 sps:$4 sm:$0xff]   ;;  %v2956_v24 = vld [vmem:[#allocation5 + $0xe8] ss:$16 sps:$4 sm:$0xff]  }
  0x67   :  { %1392 = vmatprep.subr.bf16.mxu1 %v2889_v25  ;;  %v122_v47 = vld [vmem:[#allocation2 + $0x40] sm:$0xff]  ;;  %v124_v49 = vld [vmem:[#allocation2 + $0x50] sm:$0xff] }
  0x68   :  { %v2923_v52 = vld [vmem:[#allocation5 + $0x164] ss:$16 sps:$4 sm:$0xff]   ;;  %v3504_v53 = vpack.c.bf16 %v122_v47, %v115_v46  ;;  %v3506_v54 = vpack.c.bf16 %v124_v49, %v117_v48  ;;  %v2927_v56 = vld [vmem:[#allocation5 + $0x160] ss:$16 sps:$4 sm:$0xff]   ;;  %v2986_v47 = vld [vmem:[#allocation5 + $0x48] ss:$16 sps:$4 sm:$0xff]  }
  0x69   :  { %1350 = vmatpush1.bf16.msra.mxu0 %v2891_v26  ;;  %v2925_v55 = vld [vmem:[#allocation5 + $0x364] ss:$16 sps:$4 sm:$0xff]   ;;  %v2928_v57 = vld [vmem:[#allocation5 + $0x360] ss:$16 sps:$4 sm:$0xff]   ;;  %v2964_v26 = vld [vmem:[#allocation5 + $0xcc] ss:$16 sps:$4 sm:$0xff]  }
  0x6a   :  { %1393 = vmatpush1.bf16.msra.mxu1 %v2892_v27  ;;  %1351 = vmatprep.subr.bf16.mxu0 %v2893_v28  ;;  %v2929_v58 = vld [vmem:[#allocation5 + $0x144] ss:$16 sps:$4 sm:$0xff]   ;;  %v2933_v60 = vld [vmem:[#allocation5 + $0x140] ss:$16 sps:$4 sm:$0xff]   ;;  %v2962_v28 = vld [vmem:[#allocation5 + $0xc8] ss:$16 sps:$4 sm:$0xff]  }
  0x6b   :  { %1394 = vmatprep.subr.bf16.mxu1 %v2895_v29  ;;  %1369 = vmatprep.mubr.bf16.mxu0 %v3504_v53  ;;  %v2931_v59 = vld [vmem:[#allocation5 + $0x344] ss:$16 sps:$4 sm:$0xff]   ;;  %v2934_v61 = vld [vmem:[#allocation5 + $0x340] ss:$16 sps:$4 sm:$0xff]   ;;  %v2994_v49 = vld [vmem:[#allocation5 + $0x2c] ss:$16 sps:$4 sm:$0xff]  }
  0x6c   :  { %1412 = vmatprep.mubr.bf16.mxu1 %v3506_v54  ;;  %v2935_v62 = vld [vmem:[#allocation5 + $0x124] ss:$16 sps:$4 sm:$0xff]   ;;  %v2939_v0 = vld [vmem:[#allocation5 + $0x120] ss:$16 sps:$4 sm:$0xff]  }
  0x6d   :  { %1352 = vmatpush1.bf16.msra.mxu0 %v2897_v30  ;;  %v2937_v63 = vld [vmem:[#allocation5 + $0x324] ss:$16 sps:$4 sm:$0xff]   ;;  %v2940_v1 = vld [vmem:[#allocation5 + $0x320] ss:$16 sps:$4 sm:$0xff]   ;;  %v2970_v30 = vld [vmem:[#allocation5 + $0xac] ss:$16 sps:$4 sm:$0xff]  }
  0x6e   :  { %1395 = vmatpush1.bf16.msra.mxu1 %v2898_v31  ;;  %1353 = vmatprep.subr.bf16.mxu0 %v2899_v32  ;;  %v2941_v2 = vld [vmem:[#allocation5 + $0x104] ss:$16 sps:$4 sm:$0xff]   ;;  %v2945_v4 = vld [vmem:[#allocation5 + $0x100] ss:$16 sps:$4 sm:$0xff]   ;;  %v2968_v32 = vld [vmem:[#allocation5 + $0xa8] ss:$16 sps:$4 sm:$0xff]  }
  0x6f   :  { %1396 = vmatprep.subr.bf16.mxu1 %v2901_v33  ;;  %v2943_v3 = vld [vmem:[#allocation5 + $0x304] ss:$16 sps:$4 sm:$0xff]   ;;  %v2946_v5 = vld [vmem:[#allocation5 + $0x300] ss:$16 sps:$4 sm:$0xff]  }
  0x70   :  { %v114_v6 = vld [vmem:[#allocation2] sm:$0xff]  ;;  %v116_v8 = vld [vmem:[#allocation2 + $0x10] sm:$0xff] }
  0x71   :  { %1354 = vmatpush2.bf16.msra.mxu0 %v2903_v34  ;;  %v2949_v10 = vld [vmem:[#allocation5 + $0x4e4] ss:$16 sps:$4 sm:$0xff]   ;;  %v3510_v12 = vpack.c.bf16 %v121_v7, %v114_v6  ;;  %v3512_v13 = vpack.c.bf16 %v123_v9, %v116_v8  ;;  %v2947_v14 = vld [vmem:[#allocation5 + $0x4e0] ss:$16 sps:$4 sm:$0xff]   ;;  %v2976_v34 = vld [vmem:[#allocation5 + $0x8c] ss:$16 sps:$4 sm:$0xff]  }
  0x72   :  { %1397 = vmatpush2.bf16.msra.mxu1 %v2904_v35  ;;  %1355 = vmatprep.subr.bf16.mxu0 %v2905_v36  ;;  %v2952_v11 = vld [vmem:[#allocation5 + $0x604] ss:$16 sps:$4 sm:$0xff]   ;;  %v2950_v15 = vld [vmem:[#allocation5 + $0x600] ss:$16 sps:$4 sm:$0xff]   ;;  %v2974_v36 = vld [vmem:[#allocation5 + $0x88] ss:$16 sps:$4 sm:$0xff]  }
  0x73   :  { %1398 = vmatprep.subr.bf16.mxu1 %v2907_v37  ;;  %v2955_v16 = vld [vmem:[#allocation5 + $0x4c4] ss:$16 sps:$4 sm:$0xff]   ;;  %v2953_v18 = vld [vmem:[#allocation5 + $0x4c0] ss:$16 sps:$4 sm:$0xff]   ;;  %v3024_v6 = vld [vmem:[#allocation5 + $0x18c] ss:$16 sps:$4 sm:$0xff]  }
  0x74   :  { %v120_v19 = vld [vmem:[#allocation2 + $0x30] sm:$0xff]  ;;  %v3022_v8 = vld [vmem:[#allocation5 + $0x188] ss:$16 sps:$4 sm:$0xff]  }
  0x75   :  { %1356 = vmatpush2.bf16.msra.mxu0 %v2909_v38  ;;  %v2961_v22 = vld [vmem:[#allocation5 + $0x4a4] ss:$16 sps:$4 sm:$0xff]   ;;  %v3517_v23 = vpack.c.bf16 %v127_v20, %v120_v19  ;;  %v2959_v25 = vld [vmem:[#allocation5 + $0x4a0] ss:$16 sps:$4 sm:$0xff]   ;;  %v2982_v38 = vld [vmem:[#allocation5 + $0x6c] ss:$16 sps:$4 sm:$0xff]  }
  0x76   :  { %1399 = vmatpush2.bf16.msra.mxu1 %v2910_v39  ;;  %1357 = vmatprep.subr.bf16.mxu0 %v2911_v40  ;;  %v2967_v27 = vld [vmem:[#allocation5 + $0x484] ss:$16 sps:$4 sm:$0xff]   ;;  %v2965_v29 = vld [vmem:[#allocation5 + $0x480] ss:$16 sps:$4 sm:$0xff]   ;;  %v2980_v40 = vld [vmem:[#allocation5 + $0x68] ss:$16 sps:$4 sm:$0xff]  }
  0x77   :  { %1400 = vmatprep.subr.bf16.mxu1 %v2913_v41  ;;  %v2973_v31 = vld [vmem:[#allocation5 + $0x464] ss:$16 sps:$4 sm:$0xff]   ;;  %v2971_v33 = vld [vmem:[#allocation5 + $0x460] ss:$16 sps:$4 sm:$0xff]   ;;  %v119_v41 = vld [vmem:[#allocation2 + $0x28] sm:$0xff] }
  0x78   :  { %v2979_v35 = vld [vmem:[#allocation5 + $0x444] ss:$16 sps:$4 sm:$0xff]   ;;  %v2977_v37 = vld [vmem:[#allocation5 + $0x440] ss:$16 sps:$4 sm:$0xff]  }
  0x79   :  { %1358 = vmatpush2.bf16.msra.mxu0 %v2915_v42  ;;  %v2985_v39 = vld [vmem:[#allocation5 + $0x424] ss:$16 sps:$4 sm:$0xff]   ;;  %v2989_v48 = vld [vmem:[#allocation5 + $0x400] ss:$16 sps:$4 sm:$0xff]  }
  0x7a   :  { %1401 = vmatpush2.bf16.msra.mxu1 %v2916_v43  ;;  %1359 = vmatprep.subr.bf16.mxu0 %v2917_v44  ;;  %v126_v42 = vld [vmem:[#allocation2 + $0x60] sm:$0xff] }
  0x7b   :  { %1402 = vmatprep.subr.bf16.mxu1 %v2919_v45  ;;  %v2983_v43 = vld [vmem:[#allocation5 + $0x420] ss:$16 sps:$4 sm:$0xff]   ;;  %v3522_v44 = vpack.c.bf16 %v126_v42, %v119_v41  ;;  %v2988_v45 = vld [vmem:[#allocation5 + $0x4c] ss:$16 sps:$4 sm:$0xff]   ;;  %v2991_v46 = vld [vmem:[#allocation5 + $0x404] ss:$16 sps:$4 sm:$0xff]  }
  0x7c   :  { %v3027_v7 = vld [vmem:[#allocation5 + $0x544] ss:$16 sps:$4 sm:$0xff]   ;;  %v3025_v9 = vld [vmem:[#allocation5 + $0x540] ss:$16 sps:$4 sm:$0xff]   ;;  %v3066_v41 = vld [vmem:[#allocation5 + $0x4ac] ss:$16 sps:$4 sm:$0xff]  }
  0x7d   :  { %1360 = vmatpush2.bf16.msra.mxu0 %v2921_v50  ;;  %v2997_v50 = vld [vmem:[#allocation5 + $0x5e4] ss:$16 sps:$4 sm:$0xff]   ;;  %v3037_v19 = vld [vmem:[#allocation5 + $0x500] ss:$16 sps:$4 sm:$0xff]   ;;  %v3069_v42 = vld [vmem:[#allocation5 + $0x26c] ss:$16 sps:$4 sm:$0xff]  }
  0x7e   :  { %1403 = vmatpush2.bf16.msra.mxu1 %v2922_v51  ;;  %1361 = vmatprep.subr.bf16.mxu0 %v2923_v52  ;;  %v2992_v51 = vld [vmem:[#allocation5 + $0x28] ss:$16 sps:$4 sm:$0xff]   ;;  %v2995_v52 = vld [vmem:[#allocation5 + $0x5e0] ss:$16 sps:$4 sm:$0xff]  }
  0x7f   :  { %1404 = vmatprep.subr.bf16.mxu1 %v2925_v55  ;;  %v3003_v55 = vld [vmem:[#allocation5 + $0x5c4] ss:$16 sps:$4 sm:$0xff]  }
  0x80   :  { %v118_v20 = vld [vmem:[#allocation2 + $0x20] sm:$0xff] }
  0x81   :  { %1362 = vmatpush2.bf16.msra.mxu0 %v2927_v56  ;;  %v2998_v56 = vld [vmem:[#allocation5 + $0x8] ss:$16 sps:$4 sm:$0xff]  }
  0x82   :  { %1405 = vmatpush2.bf16.msra.mxu1 %v2928_v57  ;;  %1363 = vmatprep.subr.bf16.mxu0 %v2929_v58  ;;  %v3001_v57 = vld [vmem:[#allocation5 + $0x5c0] ss:$16 sps:$4 sm:$0xff]   ;;  %v3006_v58 = vld [vmem:[#allocation5 + $0x1ec] ss:$16 sps:$4 sm:$0xff]  }
  0x83   :  { %1406 = vmatprep.subr.bf16.mxu1 %v2931_v59  ;;  %v3009_v59 = vld [vmem:[#allocation5 + $0x5a4] ss:$16 sps:$4 sm:$0xff]  }
  0x85   :  { %1364 = vmatpush2.bf16.msra.mxu0 %v2933_v60  ;;  %v3004_v60 = vld [vmem:[#allocation5 + $0x1e8] ss:$16 sps:$4 sm:$0xff]  }
  0x86   :  { %1407 = vmatpush2.bf16.msra.mxu1 %v2934_v61  ;;  %1365 = vmatprep.subr.bf16.mxu0 %v2935_v62  ;;  %v3007_v61 = vld [vmem:[#allocation5 + $0x5a0] ss:$16 sps:$4 sm:$0xff]   ;;  %v3012_v62 = vld [vmem:[#allocation5 + $0x1cc] ss:$16 sps:$4 sm:$0xff]  }
  0x87   :  { %1408 = vmatprep.subr.bf16.mxu1 %v2937_v63  ;;  %v3015_v63 = vld [vmem:[#allocation5 + $0x584] ss:$16 sps:$4 sm:$0xff]  }
  0x89   :  { %1366 = vmatpush2.bf16.msra.mxu0 %v2939_v0  ;;  %v3010_v0 = vld [vmem:[#allocation5 + $0x1c8] ss:$16 sps:$4 sm:$0xff]  }
  0x8a   :  { %1409 = vmatpush2.bf16.msra.mxu1 %v2940_v1  ;;  %1367 = vmatprep.subr.bf16.mxu0 %v2941_v2  ;;  %v3013_v1 = vld [vmem:[#allocation5 + $0x580] ss:$16 sps:$4 sm:$0xff]   ;;  %v3018_v2 = vld [vmem:[#allocation5 + $0x1ac] ss:$16 sps:$4 sm:$0xff]  }
  0x8b   :  { %1410 = vmatprep.subr.bf16.mxu1 %v2943_v3  ;;  %v3021_v3 = vld [vmem:[#allocation5 + $0x564] ss:$16 sps:$4 sm:$0xff]  }
  0x8d   :  { %1368 = vmatpush2.bf16.msra.mxu0 %v2945_v4  ;;  %v3016_v4 = vld [vmem:[#allocation5 + $0x1a8] ss:$16 sps:$4 sm:$0xff]  }
  0x8e   :  { %1411 = vmatpush2.bf16.msra.mxu1 %v2946_v5  ;;  %1423 = vmatprep.subr.bf16.mxu0 %v2949_v10  ;;  %v3019_v5 = vld [vmem:[#allocation5 + $0x560] ss:$16 sps:$4 sm:$0xff]   ;;  %v3030_v10 = vld [vmem:[#allocation5 + $0x16c] ss:$16 sps:$4 sm:$0xff]  }
  0x8f   :  { %1480 = vmatprep.subr.bf16.mxu1 %v2952_v11  ;;  %v3033_v11 = vld [vmem:[#allocation5 + $0x524] ss:$16 sps:$4 sm:$0xff]  }
  0x90   :  { %1370 = vmatmul.mubr.bf16.vlgmr.msra.gmra.mxu0 %v3510_v12 }
  0x91   :  { %1413 = vmatmul.mubr.bf16.vlgmr.msra.gmra.mxu1 %v3512_v13  ;;  %1424 = vmatpush1.bf16.msra.mxu0 %v2947_v14  ;;  %v3028_v14 = vld [vmem:[#allocation5 + $0x168] ss:$16 sps:$4 sm:$0xff]  }
  0x92   :  { %1481 = vmatpush1.bf16.msra.mxu1 %v2950_v15  ;;  %1425 = vmatprep.subr.bf16.mxu0 %v2955_v16  ;;  %v3031_v15 = vld [vmem:[#allocation5 + $0x520] ss:$16 sps:$4 sm:$0xff]   ;;  %v3036_v16 = vld [vmem:[#allocation5 + $0x14c] ss:$16 sps:$4 sm:$0xff]  }
  0x93   :  { %1498 = vmatprep.mubr.bf16.mxu1 %v3429_v21  ;;  %1509 = vmatprep.subr.bf16.mxu1 %v2958_v17  ;;  %v3039_v17 = vld [vmem:[#allocation5 + $0x504] ss:$16 sps:$4 sm:$0xff]  }
  0x94   :  { %1455 = vmatprep.mubr.bf16.mxu0 %v3522_v44 }
  0x95   :  { %1426 = vmatpush1.bf16.msra.mxu0 %v2953_v18  ;;  %v3034_v18 = vld [vmem:[#allocation5 + $0x148] ss:$16 sps:$4 sm:$0xff]  }
  0x96   :  { %1427 = vmatprep.subr.bf16.mxu0 %v2961_v22  ;;  %v125_v22 = vld [vmem:[#allocation2 + $0x58] sm:$0xff] }
  0x99   :  { %2690 = vmatmul.mubr.msk.bf16.vlgmr.msra.gmra.mxu1 %vm1333_vm0, %v3517_v23  ;;  %1428 = vmatpush1.bf16.msra.mxu0 %v2959_v25  ;;  %v3045_v25 = vld [vmem:[#allocation5 + $0x2ec] ss:$16 sps:$4 sm:$0xff]  }
  0x9a   :  { %1510 = vmatpush1.bf16.msra.mxu1 %v2956_v24  ;;  %1429 = vmatprep.subr.bf16.mxu0 %v2967_v27  ;;  %v3042_v24 = vld [vmem:[#allocation5 + $0x12c] ss:$16 sps:$4 sm:$0xff]   ;;  %v3040_v27 = vld [vmem:[#allocation5 + $0x128] ss:$16 sps:$4 sm:$0xff]  }
  0x9b   :  { %1511 = vmatprep.subr.bf16.mxu1 %v2964_v26  ;;  %1541 = vmatprep.mubr.bf16.mxu1 %v3504_v53  ;;  %v3000_v53 = vld [vmem:[#allocation5 + $0xc] ss:$16 sps:$4 sm:$0xff]   ;;  %v3525_v26 = vpack.c.bf16 %v125_v22, %v118_v20  ;;  %v3124_v20 = vld [vmem:[#allocation5 + $0x568] ss:$16 sps:$4 sm:$0xff]  }
  0x9c   :  { %v3127_v22 = vld [vmem:[#allocation5 + $0x328] ss:$16 sps:$4 sm:$0xff]  }
  0x9d   :  { %1430 = vmatpush1.bf16.msra.mxu0 %v2965_v29  ;;  %v3048_v29 = vld [vmem:[#allocation5 + $0x10c] ss:$16 sps:$4 sm:$0xff]  }
  0x9e   :  { %1512 = vmatpush1.bf16.msra.mxu1 %v2962_v28  ;;  %1431 = vmatprep.subr.bf16.mxu0 %v2973_v31  ;;  %v3043_v28 = vld [vmem:[#allocation5 + $0x2e8] ss:$16 sps:$4 sm:$0xff]  }
  0x9f   :  { %1513 = vmatprep.subr.bf16.mxu1 %v2970_v30  ;;  %v3051_v30 = vld [vmem:[#allocation5 + $0x2cc] ss:$16 sps:$4 sm:$0xff]   ;;  %v3046_v31 = vld [vmem:[#allocation5 + $0x108] ss:$16 sps:$4 sm:$0xff]  }
  0xa1   :  { %1432 = vmatpush1.bf16.msra.mxu0 %v2971_v33  ;;  %v3054_v33 = vld [vmem:[#allocation5 + $0x4ec] ss:$16 sps:$4 sm:$0xff]  }
  0xa2   :  { %1514 = vmatpush1.bf16.msra.mxu1 %v2968_v32  ;;  %1433 = vmatprep.subr.bf16.mxu0 %v2979_v35  ;;  %v3049_v32 = vld [vmem:[#allocation5 + $0x2c8] ss:$16 sps:$4 sm:$0xff]  }
  0xa3   :  { %1515 = vmatprep.subr.bf16.mxu1 %v2976_v34  ;;  %v3057_v34 = vld [vmem:[#allocation5 + $0x2ac] ss:$16 sps:$4 sm:$0xff]   ;;  %v3052_v35 = vld [vmem:[#allocation5 + $0x4e8] ss:$16 sps:$4 sm:$0xff]  }
  0xa5   :  { %1434 = vmatpush1.bf16.msra.mxu0 %v2977_v37  ;;  %v3060_v37 = vld [vmem:[#allocation5 + $0x4cc] ss:$16 sps:$4 sm:$0xff]  }
  0xa6   :  { %1516 = vmatpush1.bf16.msra.mxu1 %v2974_v36  ;;  %1435 = vmatprep.subr.bf16.mxu0 %v2985_v39  ;;  %v3055_v36 = vld [vmem:[#allocation5 + $0x2a8] ss:$16 sps:$4 sm:$0xff]  }
  0xa7   :  { %1517 = vmatprep.subr.bf16.mxu1 %v2982_v38  ;;  %v3063_v38 = vld [vmem:[#allocation5 + $0x28c] ss:$16 sps:$4 sm:$0xff]   ;;  %v3058_v39 = vld [vmem:[#allocation5 + $0x4c8] ss:$16 sps:$4 sm:$0xff]  }
  0xa9   :  { %1436 = vmatpush1.bf16.msra.mxu0 %v2983_v43  ;;  %v3064_v43 = vld [vmem:[#allocation5 + $0x4a8] ss:$16 sps:$4 sm:$0xff]  }
  0xaa   :  { %1518 = vmatpush1.bf16.msra.mxu1 %v2980_v40  ;;  %1437 = vmatprep.subr.bf16.mxu0 %v2991_v46  ;;  %v3061_v40 = vld [vmem:[#allocation5 + $0x288] ss:$16 sps:$4 sm:$0xff]   ;;  %v3075_v46 = vld [vmem:[#allocation5 + $0x24c] ss:$16 sps:$4 sm:$0xff]  }
  0xab   :  { %1519 = vmatprep.subr.bf16.mxu1 %v2988_v45  ;;  %v3067_v45 = vld [vmem:[#allocation5 + $0x268] ss:$16 sps:$4 sm:$0xff]  }
  0xad   :  { %1438 = vmatpush1.bf16.msra.mxu0 %v2989_v48  ;;  %v3078_v48 = vld [vmem:[#allocation5 + $0x46c] ss:$16 sps:$4 sm:$0xff]  }
  0xae   :  { %1520 = vmatpush1.bf16.msra.mxu1 %v2986_v47  ;;  %1439 = vmatprep.subr.bf16.mxu0 %v2997_v50  ;;  %v3070_v47 = vld [vmem:[#allocation5 + $0x488] ss:$16 sps:$4 sm:$0xff]  }
  0xaf   :  { %1521 = vmatprep.subr.bf16.mxu1 %v2994_v49  ;;  %v3081_v49 = vld [vmem:[#allocation5 + $0x22c] ss:$16 sps:$4 sm:$0xff]   ;;  %v3076_v50 = vld [vmem:[#allocation5 + $0x468] ss:$16 sps:$4 sm:$0xff]  }
  0xb1   :  { %1440 = vmatpush2.bf16.msra.mxu0 %v2995_v52  ;;  %v3084_v52 = vld [vmem:[#allocation5 + $0x44c] ss:$16 sps:$4 sm:$0xff]  }
  0xb2   :  { %1522 = vmatpush1.bf16.msra.mxu1 %v2992_v51  ;;  %1441 = vmatprep.subr.bf16.mxu0 %v3003_v55  ;;  %v3079_v51 = vld [vmem:[#allocation5 + $0x228] ss:$16 sps:$4 sm:$0xff]  }
  0xb3   :  { %1523 = vmatprep.subr.bf16.mxu1 %v3000_v53  ;;  %v3082_v53 = vld [vmem:[#allocation5 + $0x448] ss:$16 sps:$4 sm:$0xff]  }
  0xb4   :  { %v3085_v55 = vld [vmem:[#allocation5 + $0x208] ss:$16 sps:$4 sm:$0xff]  }
  0xb5   :  { %1442 = vmatpush2.bf16.msra.mxu0 %v3001_v57  ;;  %v3093_v57 = vld [vmem:[#allocation5 + $0x3ec] ss:$16 sps:$4 sm:$0xff]  }
  0xb6   :  { %1524 = vmatpush1.bf16.msra.mxu1 %v2998_v56  ;;  %1443 = vmatprep.subr.bf16.mxu0 %v3009_v59  ;;  %v3090_v56 = vld [vmem:[#allocation5 + $0x42c] ss:$16 sps:$4 sm:$0xff]   ;;  %v3091_v59 = vld [vmem:[#allocation5 + $0x3e8] ss:$16 sps:$4 sm:$0xff]  }
  0xb7   :  { %1525 = vmatprep.subr.bf16.mxu1 %v3006_v58  ;;  %v3088_v58 = vld [vmem:[#allocation5 + $0x428] ss:$16 sps:$4 sm:$0xff]  }
  0xb9   :  { %1444 = vmatpush2.bf16.msra.mxu0 %v3007_v61  ;;  %v3099_v61 = vld [vmem:[#allocation5 + $0x3cc] ss:$16 sps:$4 sm:$0xff]  }
  0xba   :  { %1526 = vmatpush2.bf16.msra.mxu1 %v3004_v60  ;;  %1445 = vmatprep.subr.bf16.mxu0 %v3015_v63  ;;  %v3096_v60 = vld [vmem:[#allocation5 + $0x40c] ss:$16 sps:$4 sm:$0xff]   ;;  %v3097_v63 = vld [vmem:[#allocation5 + $0x3c8] ss:$16 sps:$4 sm:$0xff]  }
  0xbb   :  { %1527 = vmatprep.subr.bf16.mxu1 %v3012_v62  ;;  %v3094_v62 = vld [vmem:[#allocation5 + $0x408] ss:$16 sps:$4 sm:$0xff]  }
  0xbd   :  { %1446 = vmatpush2.bf16.msra.mxu0 %v3013_v1  ;;  %v3105_v1 = vld [vmem:[#allocation5 + $0x3ac] ss:$16 sps:$4 sm:$0xff]  }
  0xbe   :  { %1528 = vmatpush2.bf16.msra.mxu1 %v3010_v0  ;;  %1447 = vmatprep.subr.bf16.mxu0 %v3021_v3  ;;  %v3102_v0 = vld [vmem:[#allocation5 + $0x5ec] ss:$16 sps:$4 sm:$0xff]   ;;  %v3103_v3 = vld [vmem:[#allocation5 + $0x3a8] ss:$16 sps:$4 sm:$0xff]  }
  0xbf   :  { %1529 = vmatprep.subr.bf16.mxu1 %v3018_v2  ;;  %v3100_v2 = vld [vmem:[#allocation5 + $0x5e8] ss:$16 sps:$4 sm:$0xff]  }
  0xc1   :  { %1448 = vmatpush2.bf16.msra.mxu0 %v3019_v5  ;;  %v3111_v5 = vld [vmem:[#allocation5 + $0x38c] ss:$16 sps:$4 sm:$0xff]  }
  0xc2   :  { %1530 = vmatpush2.bf16.msra.mxu1 %v3016_v4  ;;  %1449 = vmatprep.subr.bf16.mxu0 %v3027_v7  ;;  %v3108_v4 = vld [vmem:[#allocation5 + $0x5cc] ss:$16 sps:$4 sm:$0xff]   ;;  %v3109_v7 = vld [vmem:[#allocation5 + $0x388] ss:$16 sps:$4 sm:$0xff]  }
  0xc3   :  { %1531 = vmatprep.subr.bf16.mxu1 %v3024_v6  ;;  %v3106_v6 = vld [vmem:[#allocation5 + $0x5c8] ss:$16 sps:$4 sm:$0xff]  }
  0xc5   :  { %1450 = vmatpush2.bf16.msra.mxu0 %v3025_v9  ;;  %v3117_v9 = vld [vmem:[#allocation5 + $0x36c] ss:$16 sps:$4 sm:$0xff]  }
  0xc6   :  { %1532 = vmatpush2.bf16.msra.mxu1 %v3022_v8  ;;  %1451 = vmatprep.subr.bf16.mxu0 %v3033_v11  ;;  %v3114_v8 = vld [vmem:[#allocation5 + $0x5ac] ss:$16 sps:$4 sm:$0xff]   ;;  %v3115_v11 = vld [vmem:[#allocation5 + $0x368] ss:$16 sps:$4 sm:$0xff]  }
  0xc7   :  { %1533 = vmatprep.subr.bf16.mxu1 %v3030_v10  ;;  %v3112_v10 = vld [vmem:[#allocation5 + $0x5a8] ss:$16 sps:$4 sm:$0xff]  }
  0xc9   :  { %1452 = vmatpush2.bf16.msra.mxu0 %v3031_v15  ;;  %v3123_v15 = vld [vmem:[#allocation5 + $0x34c] ss:$16 sps:$4 sm:$0xff]  }
  0xca   :  { %1534 = vmatpush2.bf16.msra.mxu1 %v3028_v14  ;;  %1453 = vmatprep.subr.bf16.mxu0 %v3039_v17  ;;  %v3120_v14 = vld [vmem:[#allocation5 + $0x58c] ss:$16 sps:$4 sm:$0xff]   ;;  %v3121_v17 = vld [vmem:[#allocation5 + $0x348] ss:$16 sps:$4 sm:$0xff]  }
  0xcb   :  { %1535 = vmatprep.subr.bf16.mxu1 %v3036_v16  ;;  %v3118_v16 = vld [vmem:[#allocation5 + $0x588] ss:$16 sps:$4 sm:$0xff]  }
  0xcd   :  { %1454 = vmatpush2.bf16.msra.mxu0 %v3037_v19  ;;  %v3129_v19 = vld [vmem:[#allocation5 + $0x32c] ss:$16 sps:$4 sm:$0xff]  }
  0xce   :  { %1536 = vmatpush2.bf16.msra.mxu1 %v3034_v18  ;;  %1552 = vmatprep.subr.bf16.mxu0 %v3045_v25  ;;  %v3126_v18 = vld [vmem:[#allocation5 + $0x56c] ss:$16 sps:$4 sm:$0xff]  }
  0xcf   :  { %1537 = vmatprep.subr.bf16.mxu1 %v3042_v24  ;;  %v3132_v24 = vld [vmem:[#allocation5 + $0x54c] ss:$16 sps:$4 sm:$0xff]  }
  0xd0   :  { %1456 = vmatmul.mubr.bf16.vlgmr.msra.gmra.mxu0 %v3525_v26  ;;  %v3135_v25 = vld [vmem:[#allocation5 + $0x30c] ss:$16 sps:$4 sm:$0xff]  }
  0xd1   :  { %1553 = vmatpush1.bf16.msra.mxu0 %v3043_v28  ;;  %1584 = vmatprep.mubr.bf16.mxu0 %v3506_v54  ;;  %v3072_v54 = vld [vmem:[#allocation5 + $0x48c] ss:$16 sps:$4 sm:$0xff]   ;;  %v3133_v28 = vld [vmem:[#allocation5 + $0x308] ss:$16 sps:$4 sm:$0xff]  }
  0xd2   :  { %1538 = vmatpush2.bf16.msra.mxu1 %v3040_v27  ;;  %1554 = vmatprep.subr.bf16.mxu0 %v3051_v30  ;;  %v3130_v27 = vld [vmem:[#allocation5 + $0x548] ss:$16 sps:$4 sm:$0xff]   ;;  %v3141_v30 = vld [vmem:[#allocation5 + $0x60c] ss:$16 sps:$4 sm:$0xff]  }
  0xd3   :  { %1539 = vmatprep.subr.bf16.mxu1 %v3048_v29  ;;  %v3138_v29 = vld [vmem:[#allocation5 + $0x52c] ss:$16 sps:$4 sm:$0xff]  }
  0xd5   :  { %1555 = vmatpush1.bf16.msra.mxu0 %v3049_v32  ;;  %v3139_v32 = vld [vmem:[#allocation5 + $0x608] ss:$16 sps:$4 sm:$0xff]  }
  0xd6   :  { %1540 = vmatpush2.bf16.msra.mxu1 %v3046_v31  ;;  %1556 = vmatprep.subr.bf16.mxu0 %v3057_v34  ;;  %v3136_v31 = vld [vmem:[#allocation5 + $0x528] ss:$16 sps:$4 sm:$0xff]  }
  0xd7   :  { %1595 = vmatprep.subr.bf16.mxu1 %v3054_v33  ;;  %v3144_v33 = vld [vmem:[#allocation5 + $0x50c] ss:$16 sps:$4 sm:$0xff]   ;;  %v3147_v34 = vld [vmem:[#allocation8 + $0x74] ss:$8 sps:$4 sm:$0xff]  }
  0xd9   :  { %1542 = vmatmul.mubr.bf16.vlgmr.msra.gmra.mxu1 %v3510_v12  ;;  %1557 = vmatpush1.bf16.msra.mxu0 %v3055_v36  ;;  %v3073_v12 = vld [vmem:[#allocation5 + $0x248] ss:$16 sps:$4 sm:$0xff]   ;;  %v3145_v36 = vld [vmem:[#allocation8 + $0x70] ss:$8 sps:$4 sm:$0xff]  }
  0xda   :  { %1596 = vmatpush1.bf16.msra.mxu1 %v3052_v35  ;;  %1558 = vmatprep.subr.bf16.mxu0 %v3063_v38  ;;  %v3142_v35 = vld [vmem:[#allocation5 + $0x508] ss:$16 sps:$4 sm:$0xff]   ;;  %v3148_v38 = vld [vmem:[#allocation8 + $0x60] ss:$8 sps:$4 sm:$0xff]  }
  0xdb   :  { %1597 = vmatprep.subr.bf16.mxu1 %v3060_v37  ;;  %1627 = vmatprep.mubr.bf16.mxu1 %v3522_v44  ;;  %v3087_v44 = vld [vmem:[#allocation5 + $0x20c] ss:$16 sps:$4 sm:$0xff]   ;;  %v3150_v37 = vld [vmem:[#allocation8 + $0x64] ss:$8 sps:$4 sm:$0xff]  }
  0xdd   :  { %1559 = vmatpush1.bf16.msra.mxu0 %v3061_v40  ;;  %v3156_v40 = vld [vmem:[#allocation8 + $0x44] ss:$8 sps:$4 sm:$0xff]  }
  0xde   :  { %1598 = vmatpush1.bf16.msra.mxu1 %v3058_v39  ;;  %1560 = vmatprep.subr.bf16.mxu0 %v3069_v42  ;;  %v3153_v39 = vld [vmem:[#allocation8 + $0x54] ss:$8 sps:$4 sm:$0xff]  }
  0xdf   :  { %1599 = vmatprep.subr.bf16.mxu1 %v3066_v41  ;;  %v3193_v41 = vld [vmem:[#allocation8 + $0x170] ss:$8 sps:$4 sm:$0xff]   ;;  %v3195_v42 = vld [vmem:[#allocation8 + $0x174] ss:$8 sps:$4 sm:$0xff]  }
  0xe1   :  { %1561 = vmatpush1.bf16.msra.mxu0 %v3067_v45  ;;  %v3159_v45 = vld [vmem:[#allocation8 + $0x34] ss:$8 sps:$4 sm:$0xff]  }
  0xe2   :  { %1600 = vmatpush1.bf16.msra.mxu1 %v3064_v43  ;;  %1562 = vmatprep.subr.bf16.mxu0 %v3075_v46  ;;  %v3198_v43 = vld [vmem:[#allocation8 + $0x164] ss:$8 sps:$4 sm:$0xff]  }
  0xe3   :  { %1601 = vmatprep.subr.bf16.mxu1 %v3072_v54  ;;  %v3157_v54 = vld [vmem:[#allocation8 + $0x30] ss:$8 sps:$4 sm:$0xff]   ;;  %v3162_v46 = vld [vmem:[#allocation8 + $0x24] ss:$8 sps:$4 sm:$0xff]  }
  0xe5   :  { %1563 = vmatpush1.bf16.msra.mxu0 %v3073_v12  ;;  %v3204_v12 = vld [vmem:[#allocation8 + $0x144] ss:$8 sps:$4 sm:$0xff]  }
  0xe6   :  { %1602 = vmatpush1.bf16.msra.mxu1 %v3070_v47  ;;  %1564 = vmatprep.subr.bf16.mxu0 %v3081_v49  ;;  %v3199_v47 = vld [vmem:[#allocation8 + $0x150] ss:$8 sps:$4 sm:$0xff]   ;;  %v3165_v49 = vld [vmem:[#allocation8 + $0x14] ss:$8 sps:$4 sm:$0xff]  }
  0xe7   :  { %1603 = vmatprep.subr.bf16.mxu1 %v3078_v48  ;;  %v3160_v48 = vld [vmem:[#allocation8 + $0x20] ss:$8 sps:$4 sm:$0xff]  }
  0xe9   :  { %1565 = vmatpush1.bf16.msra.mxu0 %v3079_v51  ;;  %v3207_v51 = vld [vmem:[#allocation8 + $0x134] ss:$8 sps:$4 sm:$0xff]  }
  0xea   :  { %1604 = vmatpush1.bf16.msra.mxu1 %v3076_v50  ;;  %1566 = vmatprep.subr.bf16.mxu0 %v3087_v44  ;;  %v3202_v50 = vld [vmem:[#allocation8 + $0x140] ss:$8 sps:$4 sm:$0xff]   ;;  %v3168_v44 = vld [vmem:[#allocation8 + $0x4] ss:$8 sps:$4 sm:$0xff]  }
  0xeb   :  { %1605 = vmatprep.subr.bf16.mxu1 %v3084_v52  ;;  %v3163_v52 = vld [vmem:[#allocation8 + $0x10] ss:$8 sps:$4 sm:$0xff]  }
  0xed   :  { %1567 = vmatpush1.bf16.msra.mxu0 %v3085_v55  ;;  %v3210_v55 = vld [vmem:[#allocation8 + $0x124] ss:$8 sps:$4 sm:$0xff]  }
  0xee   :  { %1606 = vmatpush1.bf16.msra.mxu1 %v3082_v53  ;;  %1568 = vmatprep.subr.bf16.mxu0 %v3093_v57  ;;  %v3205_v53 = vld [vmem:[#allocation8 + $0x130] ss:$8 sps:$4 sm:$0xff]   ;;  %v3171_v57 = vld [vmem:[#allocation8 + $0xf4] ss:$8 sps:$4 sm:$0xff]  }
  0xef   :  { %1607 = vmatprep.subr.bf16.mxu1 %v3090_v56  ;;  %v3166_v56 = vld [vmem:[#allocation8] ss:$8 sps:$4 sm:$0xff]  }
  0xf1   :  { %1569 = vmatpush2.bf16.msra.mxu0 %v3091_v59  ;;  %v3213_v59 = vld [vmem:[#allocation8 + $0x114] ss:$8 sps:$4 sm:$0xff]  }
  0xf2   :  { %1608 = vmatpush1.bf16.msra.mxu1 %v3088_v58  ;;  %1570 = vmatprep.subr.bf16.mxu0 %v3099_v61  ;;  %v3208_v58 = vld [vmem:[#allocation8 + $0x120] ss:$8 sps:$4 sm:$0xff]   ;;  %v3174_v61 = vld [vmem:[#allocation8 + $0xe4] ss:$8 sps:$4 sm:$0xff]  }
  0xf3   :  { %1609 = vmatprep.subr.bf16.mxu1 %v3096_v60  ;;  %v3169_v60 = vld [vmem:[#allocation8 + $0xf0] ss:$8 sps:$4 sm:$0xff]  }
  0xf5   :  { %1571 = vmatpush2.bf16.msra.mxu0 %v3097_v63  ;;  %v3216_v63 = vld [vmem:[#allocation8 + $0x104] ss:$8 sps:$4 sm:$0xff]  }
  0xf6   :  { %1610 = vmatpush1.bf16.msra.mxu1 %v3094_v62  ;;  %1572 = vmatprep.subr.bf16.mxu0 %v3105_v1  ;;  %v3211_v62 = vld [vmem:[#allocation8 + $0x110] ss:$8 sps:$4 sm:$0xff]   ;;  %v3177_v1 = vld [vmem:[#allocation8 + $0xd4] ss:$8 sps:$4 sm:$0xff]  }
  0xf7   :  { %1611 = vmatprep.subr.bf16.mxu1 %v3102_v0  ;;  %v3172_v0 = vld [vmem:[#allocation8 + $0xe0] ss:$8 sps:$4 sm:$0xff]  }
  0xf9   :  { %1573 = vmatpush2.bf16.msra.mxu0 %v3103_v3  ;;  %v3219_v3 = vld [vmem:[#allocation8 + $0x1f4] ss:$8 sps:$4 sm:$0xff]  }
  0xfa   :  { %1612 = vmatpush2.bf16.msra.mxu1 %v3100_v2  ;;  %1574 = vmatprep.subr.bf16.mxu0 %v3111_v5  ;;  %v3214_v2 = vld [vmem:[#allocation8 + $0x100] ss:$8 sps:$4 sm:$0xff]   ;;  %v3180_v5 = vld [vmem:[#allocation8 + $0xc4] ss:$8 sps:$4 sm:$0xff]  }
  0xfb   :  { %1613 = vmatprep.subr.bf16.mxu1 %v3108_v4  ;;  %v3175_v4 = vld [vmem:[#allocation8 + $0xd0] ss:$8 sps:$4 sm:$0xff]  }
  0xfd   :  { %1575 = vmatpush2.bf16.msra.mxu0 %v3109_v7  ;;  %v3222_v7 = vld [vmem:[#allocation8 + $0x1e4] ss:$8 sps:$4 sm:$0xff]  }
  0xfe   :  { %1614 = vmatpush2.bf16.msra.mxu1 %v3106_v6  ;;  %1576 = vmatprep.subr.bf16.mxu0 %v3117_v9  ;;  %v3217_v6 = vld [vmem:[#allocation8 + $0x1f0] ss:$8 sps:$4 sm:$0xff]   ;;  %v3183_v9 = vld [vmem:[#allocation8 + $0xb4] ss:$8 sps:$4 sm:$0xff]  }
  0xff   :  { %1615 = vmatprep.subr.bf16.mxu1 %v3114_v8  ;;  %v3178_v8 = vld [vmem:[#allocation8 + $0xc0] ss:$8 sps:$4 sm:$0xff]  }
 0x101   :  { %1577 = vmatpush2.bf16.msra.mxu0 %v3115_v11  ;;  %v3225_v11 = vld [vmem:[#allocation8 + $0x1d4] ss:$8 sps:$4 sm:$0xff]  }
 0x102   :  { %1616 = vmatpush2.bf16.msra.mxu1 %v3112_v10  ;;  %1578 = vmatprep.subr.bf16.mxu0 %v3123_v15  ;;  %v3220_v10 = vld [vmem:[#allocation8 + $0x1e0] ss:$8 sps:$4 sm:$0xff]   ;;  %v3186_v15 = vld [vmem:[#allocation8 + $0xa4] ss:$8 sps:$4 sm:$0xff]  }
 0x103   :  { %1617 = vmatprep.subr.bf16.mxu1 %v3120_v14  ;;  %v3181_v14 = vld [vmem:[#allocation8 + $0xb0] ss:$8 sps:$4 sm:$0xff]  }
 0x105   :  { %1579 = vmatpush2.bf16.msra.mxu0 %v3121_v17  ;;  %v3184_v17 = vld [vmem:[#allocation8 + $0xa0] ss:$8 sps:$4 sm:$0xff]  }
 0x106   :  { %1618 = vmatpush2.bf16.msra.mxu1 %v3118_v16  ;;  %1580 = vmatprep.subr.bf16.mxu0 %v3129_v19  ;;  %v3223_v16 = vld [vmem:[#allocation8 + $0x1d0] ss:$8 sps:$4 sm:$0xff]  }
 0x107   :  { %1619 = vmatprep.subr.bf16.mxu1 %v3126_v18  ;;  %v3189_v18 = vld [vmem:[#allocation8 + $0x94] ss:$8 sps:$4 sm:$0xff]   ;;  %v3187_v19 = vld [vmem:[#allocation8 + $0x90] ss:$8 sps:$4 sm:$0xff]  }
 0x109   :  { %1581 = vmatpush2.bf16.msra.mxu0 %v3127_v22  ;;  %v3190_v22 = vld [vmem:[#allocation8 + $0x80] ss:$8 sps:$4 sm:$0xff]  }
 0x10a   :  { %1620 = vmatpush2.bf16.msra.mxu1 %v3124_v20  ;;  %1582 = vmatprep.subr.bf16.mxu0 %v3135_v25  ;;  %v3192_v20 = vld [vmem:[#allocation8 + $0x84] ss:$8 sps:$4 sm:$0xff]   ;;  %v3226_v25 = vld [vmem:[#allocation8 + $0x1c0] ss:$8 sps:$4 sm:$0xff]  }
 0x10b   :  { %1621 = vmatprep.subr.bf16.mxu1 %v3132_v24  ;;  %v3228_v24 = vld [vmem:[#allocation8 + $0x1c4] ss:$8 sps:$4 sm:$0xff]  }
 0x10d   :  { %1583 = vmatpush2.bf16.msra.mxu0 %v3133_v28  ;;  %v3229_v28 = vld [vmem:[#allocation8 + $0x1b0] ss:$8 sps:$4 sm:$0xff]  }
 0x10e   :  { %1622 = vmatpush2.bf16.msra.mxu1 %v3130_v27  ;;  %1652 = vmatprep.subr.bf16.mxu0 %v3141_v30  ;;  %v3231_v27 = vld [vmem:[#allocation8 + $0x1b4] ss:$8 sps:$4 sm:$0xff]   ;;  %v3232_v30 = vld [vmem:[#allocation8 + $0x1a0] ss:$8 sps:$4 sm:$0xff]  }
 0x10f   :  { %1623 = vmatprep.subr.bf16.mxu1 %v3138_v29  ;;  %v3234_v29 = vld [vmem:[#allocation8 + $0x1a4] ss:$8 sps:$4 sm:$0xff]  }
 0x110   :  { %1585 = vmatmul.mubr.bf16.vlgmr.msra.gmra.mxu0 %v3512_v13  ;;  %v3151_v13 = vld [vmem:[#allocation8 + $0x50] ss:$8 sps:$4 sm:$0xff]  }
 0x111   :  { %1653 = vmatpush1.bf16.msra.mxu0 %v3139_v32  ;;  %1670 = vmatprep.mubr.bf16.mxu0 %v3429_v21  ;;  %v3154_v21 = vld [vmem:[#allocation8 + $0x40] ss:$8 sps:$4 sm:$0xff]   ;;  %v3235_v32 = vld [vmem:[#allocation8 + $0x190] ss:$8 sps:$4 sm:$0xff]  }
 0x112   :  { %1624 = vmatpush2.bf16.msra.mxu1 %v3136_v31  ;;  %2089 = vmatprep.subr.bf16.mxu0 %v3147_v34  ;;  %v3237_v31 = vld [vmem:[#allocation8 + $0x194] ss:$8 sps:$4 sm:$0xff]   ;;  %v3238_v34 = vld [vmem:[#allocation8 + $0x180] ss:$8 sps:$4 sm:$0xff]  }
 0x113   :  { %1625 = vmatprep.subr.bf16.mxu1 %v3144_v33  ;;  %v3240_v33 = vld [vmem:[#allocation8 + $0x184] ss:$8 sps:$4 sm:$0xff]  }
 0x116   :  { %1626 = vmatpush2.bf16.msra.mxu1 %v3142_v35 }
 0x117   :  { %2132 = vmatprep.subr.bf16.mxu1 %v3195_v42 }
 0x118   :  { %2691 = vmatmul.mubr.msk.bf16.vlgmr.msra.gmra.mxu0 %vm1333_vm0, %v3517_v23  ;;  %v3201_v23 = vld [vmem:[#allocation8 + $0x154] ss:$8 sps:$4 sm:$0xff]  }
 0x119   :  { %1628 = vmatmul.mubr.bf16.vlgmr.msra.gmra.mxu1 %v3525_v26  ;;  %2090 = vmatpush1.bf16.msra.mxu0 %v3145_v36  ;;  %v3196_v26 = vld [vmem:[#allocation8 + $0x160] ss:$8 sps:$4 sm:$0xff]   ;;  %v333_v36 = vlaneseq }
 0x11a   :  { %2091 = vmatprep.subr.bf16.mxu0 %v3150_v37  ;;  %2133 = vmatpush1.bf16.msra.mxu1 %v3193_v41 }
 0x11b   :  { %2134 = vmatprep.subr.bf16.mxu1 %v3198_v43 }
 0x11d   :  { %2092 = vmatpush1.bf16.msra.mxu0 %v3148_v38  ;;  %v3536_v38 = vshrl.u32 %v333_v36, 7 }
 0x11e   :  { %2093 = vmatprep.subr.bf16.mxu0 %v3153_v39  ;;  %2135 = vmatpush1.bf16.msra.mxu1 %v3196_v26 }
 0x11f   :  { %2136 = vmatprep.subr.bf16.mxu1 %v3201_v23  ;;  %v335_v41 = vsub.s32 0, %v3536_v38 }
 0x121   :  { %2094 = vmatpush1.bf16.msra.mxu0 %v3151_v13 }
 0x122   :  { %2095 = vmatprep.subr.bf16.mxu0 %v3156_v40  ;;  %2137 = vmatpush1.bf16.msra.mxu1 %v3199_v47  ;;  %v339_v40 = vsub.s32 1, %v3536_v38 }
 0x123   :  { %2138 = vmatprep.subr.bf16.mxu1 %v3204_v12 }
 0x125   :  { %2096 = vmatpush1.bf16.msra.mxu0 %v3154_v21  ;;  %v331_v21 = vld [vmem:[#allocation7] sm:$0xf] }
 0x126   :  { %2097 = vmatprep.subr.bf16.mxu0 %v3159_v45  ;;  %2139 = vmatpush1.bf16.msra.mxu1 %v3202_v50  ;;  %v340_v45 = vrot.slane %v331_v21, %v339_v40  ;;  %v336_v26 = vrot.slane %v331_v21, %v335_v41 }
 0x127   :  { %2140 = vmatprep.subr.bf16.mxu1 %v3207_v51 }
 0x129   :  { %2098 = vmatpush1.bf16.msra.mxu0 %v3157_v54 }
 0x12a   :  { %2099 = vmatprep.subr.bf16.mxu0 %v3162_v46  ;;  %2141 = vmatpush1.bf16.msra.mxu1 %v3205_v53 }
 0x12b   :  { %2142 = vmatprep.subr.bf16.mxu1 %v3210_v55 }
 0x12d   :  { %2100 = vmatpush1.bf16.msra.mxu0 %v3160_v48 }
 0x12e   :  { %2101 = vmatprep.subr.bf16.mxu0 %v3165_v49  ;;  %2143 = vmatpush1.bf16.msra.mxu1 %v3208_v58 }
 0x12f   :  { %2144 = vmatprep.subr.bf16.mxu1 %v3213_v59 }
 0x131   :  { %2102 = vmatpush1.bf16.msra.mxu0 %v3163_v52 }
 0x132   :  { %2103 = vmatprep.subr.bf16.mxu0 %v3168_v44  ;;  %2145 = vmatpush1.bf16.msra.mxu1 %v3211_v62 }
 0x133   :  { %2146 = vmatprep.subr.bf16.mxu1 %v3216_v63 }
 0x135   :  { %2104 = vmatpush1.bf16.msra.mxu0 %v3166_v56 }
 0x136   :  { %2105 = vmatprep.subr.bf16.mxu0 %v3171_v57  ;;  %2147 = vmatpush1.bf16.msra.mxu1 %v3214_v2 }
 0x137   :  { %2148 = vmatprep.subr.bf16.mxu1 %v3219_v3 }
 0x139   :  { %2106 = vmatpush2.bf16.msra.mxu0 %v3169_v60 }
 0x13a   :  { %2107 = vmatprep.subr.bf16.mxu0 %v3174_v61  ;;  %2149 = vmatpush2.bf16.msra.mxu1 %v3217_v6 }
 0x13b   :  { %2150 = vmatprep.subr.bf16.mxu1 %v3222_v7 }
 0x13d   :  { %2108 = vmatpush2.bf16.msra.mxu0 %v3172_v0 }
 0x13e   :  { %2109 = vmatprep.subr.bf16.mxu0 %v3177_v1  ;;  %2151 = vmatpush2.bf16.msra.mxu1 %v3220_v10 }
 0x13f   :  { %2152 = vmatprep.subr.bf16.mxu1 %v3225_v11 }
 0x141   :  { %2110 = vmatpush2.bf16.msra.mxu0 %v3175_v4 }
 0x142   :  { %2111 = vmatprep.subr.bf16.mxu0 %v3180_v5  ;;  %2153 = vmatpush2.bf16.msra.mxu1 %v3223_v16  ;;  %v343_v16 = vsub.s32 2, %v3536_v38 }
 0x143   :  { %2154 = vmatprep.subr.bf16.mxu1 %v3228_v24 }
 0x145   :  { %2112 = vmatpush2.bf16.msra.mxu0 %v3178_v8 }
 0x146   :  { %2113 = vmatprep.subr.bf16.mxu0 %v3183_v9  ;;  %2155 = vmatpush2.bf16.msra.mxu1 %v3226_v25 }
 0x147   :  { %2156 = vmatprep.subr.bf16.mxu1 %v3231_v27 }
 0x149   :  { %2114 = vmatpush2.bf16.msra.mxu0 %v3181_v14 }
 0x14a   :  { %2115 = vmatprep.subr.bf16.mxu0 %v3186_v15  ;;  %2157 = vmatpush2.bf16.msra.mxu1 %v3229_v28  ;;  %v347_v15 = vsub.s32 3, %v3536_v38 }
 0x14b   :  { %2158 = vmatprep.subr.bf16.mxu1 %v3234_v29 }
 0x14d   :  { %2116 = vmatpush2.bf16.msra.mxu0 %v3184_v17 }
 0x14e   :  { %2117 = vmatprep.subr.bf16.mxu0 %v3189_v18  ;;  %2159 = vmatpush2.bf16.msra.mxu1 %v3232_v30 }
 0x14f   :  { %2160 = vmatprep.subr.bf16.mxu1 %v3237_v31 }
 0x150   :  { %v1371_v39 = vpop.f32.mrf.mxu0 }
 0x151   :  { %2118 = vmatpush2.bf16.msra.mxu0 %v3187_v19  ;;  %v1414_v35 = vpop.f32.mrf.mxu1  ;;  %v1372_v47 = vadd.f32 %v1371_v39, %v336_v26 }
 0x152   :  { %2119 = vmatprep.subr.bf16.mxu0 %v3192_v20  ;;  %2161 = vmatpush2.bf16.msra.mxu1 %v3235_v32  ;;  %v1373_v42 = vpop.f32.mrf.mxu0  ;;  %v348_v20 = vrot.slane %v331_v21, %v347_v15 }
 0x153   :  { %2162 = vmatprep.subr.bf16.mxu1 %v3240_v33  ;;  %v1416_v37 = vpop.f32.mrf.mxu1  ;;  %v1374_v46 = vadd.f32 %v1373_v42, %v340_v45  ;;  %v1415_v44 = vadd.f32 %v1414_v35, %v1372_v47 }
 0x154   :  { %v1375_v23 = vpop.f32.mrf.mxu0 }
 0x155   :  { %2120 = vmatpush2.bf16.msra.mxu0 %v3190_v22  ;;  %v1418_v13 = vpop.f32.mrf.mxu1  ;;  %v1376_v48 = vadd.f32 %v1375_v23, %v336_v26  ;;  %v1417_v51 = vadd.f32 %v1416_v37, %v1374_v46  ;;  %v344_v22 = vrot.slane %v331_v21, %v343_v16 }
 0x156   :  { %2163 = vmatpush2.bf16.msra.mxu1 %v3238_v34  ;;  %v1377_v12 = vpop.f32.mrf.mxu0 }
 0x157   :  { %v1420_v43 = vpop.f32.mrf.mxu1  ;;  %v1378_v52 = vadd.f32 %v1377_v12, %v340_v45  ;;  %v1419_v55 = vadd.f32 %v1418_v13, %v1376_v48 }
 0x159   :  { %v1500_v54 = vpop.f32.mrf.mxu1  ;;  %v1421_v60 = vadd.f32 %v1420_v43, %v1378_v52 }
 0x15b   :  { %v1502_v49 = vpop.f32.mrf.mxu1 }
 0x15d   :  { %v1504_v57 = vpop.f32.mrf.mxu1 }
 0x15f   :  { %v1506_v2 = vpop.f32.mrf.mxu1 }
 0x190   :  { %v1457_v50 = vpop.f32.mrf.mxu0 }
 0x191   :  { %v1458_v58 = vadd.f32 %v1457_v50, %v1415_v44 }
 0x192   :  { %v1459_v53 = vpop.f32.mrf.mxu0 }
 0x193   :  { %v1460_v56 = vadd.f32 %v1459_v53, %v1417_v51  ;;  %v1501_v3 = vadd.f32 %v1500_v54, %v1458_v58  ;;  %v3243_v58 = vld [vmem:[#allocation10 + $0x70] sm:$0xff]  }
 0x194   :  { %v1461_v59 = vpop.f32.mrf.mxu0 }
 0x195   :  { %v1462_v61 = vadd.f32 %v1461_v59, %v1419_v55  ;;  %v1503_v63 = vadd.f32 %v1502_v49, %v1460_v56  ;;  %v1681_v8 = vmax.f32 %v1501_v3, 0.0  ;;  %v3241_v56 = vld [vmem:[#allocation10 + $0x78] sm:$0xff]   ;;  %v3244_v59 = vld [vmem:[#allocation10 + $0x30] sm:$0xff]  }
 0x196   :  { %v1463_v62 = vpop.f32.mrf.mxu0  ;;  %2782 = vmatprep.subr.bf16.mxu0 %v3241_v56  ;;  %v3252_v3 = vld [vmem:[#allocation10 + $0x10] sm:$0xff]  }
 0x197   :  { %v1505_v0 = vadd.f32 %v1504_v57, %v1462_v61  ;;  %v1464_v1 = vadd.f32 %v1463_v62, %v1421_v60  ;;  %v1682_v6 = vmax.f32 %v1503_v63, 0.0  ;;  %v3242_v57 = vld [vmem:[#allocation10 + $0x38] sm:$0xff]   ;;  %v3245_v60 = vld [vmem:[#allocation10 + $0x68] sm:$0xff]   ;;  %v3247_v62 = vld [vmem:[#allocation10 + $0x60] sm:$0xff]  }
 0x198   :  { %v3246_v61 = vld [vmem:[#allocation10 + $0x28] sm:$0xff]   ;;  %v3248_v63 = vld [vmem:[#allocation10 + $0x20] sm:$0xff]  }
 0x199   :  { %v1507_v4 = vadd.f32 %v1506_v2, %v1464_v1  ;;  %v1685_v5 = vmax.f32 %v1505_v0, 0.0  ;;  %v1543_v11 = vpop.f32.mrf.mxu1  ;;  %v3249_v0 = vld [vmem:[#allocation10 + $0x58] sm:$0xff]   ;;  %v3251_v2 = vld [vmem:[#allocation10 + $0x50] sm:$0xff]  }
 0x19a   :  { %v1544_v29 = vadd.f32 %v1543_v11, %v344_v22  ;;  %v3250_v1 = vld [vmem:[#allocation10 + $0x18] sm:$0xff]   ;;  %v3259_v11 = vld [vmem:[#allocation11 + $0x28] sm:$0xff]  }
 0x19b   :  { %v1686_v7 = vmax.f32 %v1507_v4, 0.0  ;;  %v1689_v10 = vpack.c.bf16 %v1685_v5, %v1681_v8  ;;  %v1545_v14 = vpop.f32.mrf.mxu1  ;;  %v3253_v4 = vld [vmem:[#allocation10 + $0x48] sm:$0xff]   ;;  %v3257_v8 = vld [vmem:[#allocation11 + $0x38] sm:$0xff]  }
 0x19c   :  { %v1546_v28 = vadd.f32 %v1545_v14, %v348_v20  ;;  %v3254_v5 = vld [vmem:[#allocation10 + $0x8] sm:$0xff]   ;;  %v3260_v14 = vld [vmem:[#allocation11 + $0x20] sm:$0xff]  }
 0x19d   :  { %v1690_v9 = vpack.c.bf16 %v1686_v7, %v1682_v6  ;;  %v1547_v18 = vpop.f32.mrf.mxu1  ;;  %v3255_v6 = vld [vmem:[#allocation10 + $0x40] sm:$0xff]  }
 0x19e   :  { %v1548_v32 = vadd.f32 %v1547_v18, %v344_v22  ;;  %v3256_v7 = vld [vmem:[#allocation10] sm:$0xff]  }
 0x19f   :  { %2121 = vmatprep.mubr.bf16.mxu0 %v1690_v9  ;;  %v1549_v25 = vpop.f32.mrf.mxu1  ;;  %v3430_v9 = vmov 0.0  }
 0x1a0   :  { %2122 = vmatmul.mubr.bf16.vlgmr.msra.gmra.mxu0 %v1689_v10  ;;  %v1550_v37 = vadd.f32 %v1549_v25, %v348_v20  ;;  %2813 = vmatprep.subr.bf16.mxu1 %v3430_v9  ;;  %v3258_v10 = vld [vmem:[#allocation11 + $0x30] sm:$0xff]  }
 0x1a1   :  { %2783 = vmatpush3.bf16.msra.mxu0 %v3242_v57 }
 0x1a2   :  { %2784 = vmatprep.subr.bf16.mxu0 %v3243_v58 }
 0x1a5   :  { %2785 = vmatpush3.bf16.msra.mxu0 %v3244_v59 }
 0x1a6   :  { %2786 = vmatprep.subr.bf16.mxu0 %v3245_v60 }
 0x1a9   :  { %2787 = vmatpush3.bf16.msra.mxu0 %v3246_v61 }
 0x1aa   :  { %2788 = vmatprep.subr.bf16.mxu0 %v3247_v62 }
 0x1ad   :  { %2789 = vmatpush3.bf16.msra.mxu0 %v3248_v63 }
 0x1ae   :  { %2790 = vmatprep.subr.bf16.mxu0 %v3249_v0 }
 0x1b1   :  { %2791 = vmatpush3.bf16.msra.mxu0 %v3250_v1 }
 0x1b2   :  { %2792 = vmatprep.subr.bf16.mxu0 %v3251_v2 }
 0x1b5   :  { %2793 = vmatpush3.bf16.msra.mxu0 %v3252_v3 }
 0x1b6   :  { %2794 = vmatprep.subr.bf16.mxu0 %v3253_v4 }
 0x1b9   :  { %2795 = vmatpush3.bf16.msra.mxu0 %v3254_v5 }
 0x1ba   :  { %2796 = vmatprep.subr.bf16.mxu0 %v3255_v6 }
 0x1bd   :  { %2797 = vmatpush3.bf16.msra.mxu0 %v3256_v7 }
 0x1d0   :  { %v1586_v17 = vpop.f32.mrf.mxu0 }
 0x1d1   :  { %v1587_v34 = vadd.f32 %v1586_v17, %v1544_v29  ;;  %v1757_v17 = vld [vmem:[%s3569_s4] sm:$0x3] }
 0x1d2   :  { %v1588_v19 = vpop.f32.mrf.mxu0  ;;  %v1762_v20 = vrot.slane %v1757_v17, %v335_v41  ;;  %v3261_v41 = vld [vmem:[#allocation11 + $0x18] sm:$0xff]  }
 0x1d3   :  { %v1589_v33 = vadd.f32 %v1588_v19, %v1546_v28  ;;  %v1766_v19 = vrot.slane %v1757_v17, %v339_v40 }
 0x1d4   :  { %v1590_v24 = vpop.f32.mrf.mxu0 }
 0x1d5   :  { %v1591_v39 = vadd.f32 %v1590_v24, %v1548_v32 }
 0x1d6   :  { %v1592_v27 = vpop.f32.mrf.mxu0 }
 0x1d7   :  { %v1593_v26 = vadd.f32 %v1592_v27, %v1550_v37 }
 0x1d8   :  { %v1672_v31 = vpop.f32.mrf.mxu0 }
 0x1d9   :  { %v1629_v30 = vpop.f32.mrf.mxu1 }
 0x1da   :  { %v1674_v36 = vpop.f32.mrf.mxu0  ;;  %v1630_v42 = vadd.f32 %v1629_v30, %v1587_v34 }
 0x1db   :  { %v1631_v35 = vpop.f32.mrf.mxu1 }
 0x1dc   :  { %v1632_v13 = vadd.f32 %v1631_v35, %v1589_v33  ;;  %v1676_v45 = vpop.f32.mrf.mxu0  ;;  %v1673_v48 = vadd.f32 %v1672_v31, %v1630_v42 }
 0x1dd   :  { %v1633_v43 = vpop.f32.mrf.mxu1 }
 0x1de   :  { %v1634_v21 = vadd.f32 %v1633_v43, %v1591_v39  ;;  %v1678_v54 = vpop.f32.mrf.mxu0  ;;  %v1675_v46 = vadd.f32 %v1674_v36, %v1632_v13  ;;  %v1683_v44 = vmax.f32 %v1673_v48, 0.0  ;;  %v3262_v43 = vld [vmem:[#allocation11 + $0x10] sm:$0xff]  }
 0x1df   :  { %v1635_v23 = vpop.f32.mrf.mxu1 }
 0x1e0   :  { %v1677_v47 = vadd.f32 %v1676_v45, %v1634_v21  ;;  %v1636_v12 = vadd.f32 %v1635_v23, %v1593_v26  ;;  %v1684_v51 = vmax.f32 %v1675_v46, 0.0  ;;  %v3263_v45 = vld [vmem:[#allocation11 + $0x8] sm:$0xff]   ;;  %v3264_v26 = vld [vmem:[#allocation11] sm:$0xff]  }
 0x1e1   :  { %v2756_v46 = vld [vmem:[%s3571_s6] ss:$0 sm:$0xff]  ;;  %s3385_s6 = scalar_lea.vmem %s2480_s27, 256 }
 0x1e2   :  { %v1679_v49 = vadd.f32 %v1678_v54, %v1636_v12  ;;  %v1687_v50 = vmax.f32 %v1677_v47, 0.0  ;;  %p3386_p2 = scmp.ne.s32.totalorder %s2480_s27, %s3385_s6  ;;  %p3391_p4 = scmp.lt.s32.totalorder %s3385_s6, %s3385_s6 }
 0x1e4   :  { %v1688_v52 = vmax.f32 %v1679_v49, 0.0  ;;  %v1691_v55 = vpack.c.bf16 %v1687_v50, %v1683_v44  ;;  %p3392_p5 = por %p3391_p4, %p3390_p3 }
 0x1e6   :  { %v1692_v53 = vpack.c.bf16 %v1688_v52, %v1684_v51  ;;  %p3393_p6 = pnand %p3392_p5, %p3386_p2 }
 0x1e8   :  { %2164 = vmatprep.mubr.bf16.mxu1 %v1692_v53  ;;  %v2773_v53 = vld [vmem:[%s3573_s8] ss:$0 sm:$0xff] }
 0x1e9   :  { %2165 = vmatmul.mubr.bf16.vlgmr.msra.gmra.mxu1 %v1691_v55 }
 0x1ea   :  { %2814 = vmatpush3.bf16.msra.mxu1 %v3257_v8  ;;  %2829 = vmatprep.mubr.msk.bf16.mxu1 %vm3431_vm1, %v3430_v9 }
 0x1eb   :  { %2815 = vmatprep.subr.bf16.mxu1 %v3430_v9 }
 0x1ee   :  { %2816 = vmatpush3.bf16.msra.mxu1 %v3258_v10 }
 0x1ef   :  { %2817 = vmatprep.subr.bf16.mxu1 %v3430_v9 }
 0x1f2   :  { %2818 = vmatpush3.bf16.msra.mxu1 %v3259_v11 }
 0x1f3   :  { %2819 = vmatprep.subr.bf16.mxu1 %v3430_v9 }
 0x1f6   :  { %2820 = vmatpush3.bf16.msra.mxu1 %v3260_v14 }
 0x1f7   :  { %2821 = vmatprep.subr.bf16.mxu1 %v3430_v9 }
 0x1fa   :  { %2822 = vmatpush3.bf16.msra.mxu1 %v3261_v41 }
 0x1fb   :  { %2823 = vmatprep.subr.bf16.mxu1 %v3430_v9 }
 0x1fe   :  { %2824 = vmatpush3.bf16.msra.mxu1 %v3262_v43 }
 0x1ff   :  { %2825 = vmatprep.subr.bf16.mxu1 %v3430_v9 }
 0x202   :  { %2826 = vmatpush3.bf16.msra.mxu1 %v3263_v45 }
 0x203   :  { %2827 = vmatprep.subr.bf16.mxu1 %v3430_v9 }
 0x206   :  { %2828 = vmatpush3.bf16.msra.mxu1 %v3264_v26 }
 0x260   :  { %v2123_v15 = vpop.f32.mrf.mxu0 }
 0x261   :  { %v2124_v29 = vadd.f32 %v2123_v15, %v1762_v20 }
 0x262   :  { %v2125_v16 = vpop.f32.mrf.mxu0 }
 0x263   :  { %v2126_v27 = vadd.f32 %v2125_v16, %v1766_v19 }
 0x264   :  { %v2127_v18 = vpop.f32.mrf.mxu0 }
 0x265   :  { %v2128_v28 = vadd.f32 %v2127_v18, %v1762_v20 }
 0x266   :  { %v2129_v24 = vpop.f32.mrf.mxu0 }
 0x267   :  { %v2130_v31 = vadd.f32 %v2129_v24, %v1766_v19 }
 0x2a9   :  { %v2166_v22 = vpop.f32.mrf.mxu1 }
 0x2aa   :  { %v2167_v34 = vadd.f32 %v2166_v22, %v2124_v29 }
 0x2ab   :  { %v2168_v25 = vpop.f32.mrf.mxu1 }
 0x2ac   :  { %v2169_v32 = vadd.f32 %v2168_v25, %v2126_v27  ;;  %v2175_v40 = vmax.f32 %v2167_v34, 0.0 }
 0x2ad   :  { %v2170_v30 = vpop.f32.mrf.mxu1 }
 0x2ae   :  { %v2171_v33 = vadd.f32 %v2170_v30, %v2128_v28  ;;  %v2176_v39 = vmax.f32 %v2169_v32, 0.0 }
 0x2af   :  { %v2172_v35 = vpop.f32.mrf.mxu1 }
 0x2b0   :  { %v2173_v36 = vadd.f32 %v2172_v35, %v2130_v31  ;;  %v2177_v37 = vmax.f32 %v2171_v33, 0.0 }
 0x2b2   :  { %v2178_v13 = vmax.f32 %v2173_v36, 0.0  ;;  %v2179_v38 = vpack.c.bf16 %v2177_v37, %v2175_v40 }
 0x2b4   :  { %v2180_v42 = vpack.c.bf16 %v2178_v13, %v2176_v39 }
 0x2b6   :  { %2348 = vmatprep.mubr.bf16.mxu0 %v2180_v42 }
 0x2b7   :  { %2349 = vmatmul.mubr.bf16.vlgmr.msra.gmra.mxu0 %v2179_v38 }
 0x377   :  { %v2798_v21 = vpop.f32.mrf.mxu0 }
 0x379   :  { %v2799_v23 = vpop.f32.mrf.mxu0 }
 0x37a   :  { %v2800_v54 = vadd.f32 %v2799_v23, %v2798_v21 }
 0x37b   :  { %v2801_v47 = vpop.f32.mrf.mxu0 }
 0x37c   :  { %v2351_v48 = vadd.f32 %v2800_v54, %v2756_v46 }
 0x37d   :  { %v2802_v12 = vpop.f32.mrf.mxu0 }
 0x37e   :  { %v2803_v49 = vadd.f32 %v2802_v12, %v2801_v47  ;;  %v2357_v51 = vmax.f32 %v2351_v48, 0.0 }
 0x380   :  { %v2354_v50 = vadd.f32 %v2803_v49, %v2756_v46 }
 0x382   :  { %v2358_v52 = vmax.f32 %v2354_v50, 0.0 }
 0x384   :  { %v2359_v44 = vpack.c.bf16 %v2358_v52, %v2357_v51 }
 0x386   :  { %2830 = vmatmul.mubr.bf16.vlgmr.msra.gmra.mxu1 %v2359_v44 }
 0x446   :  { %v2465_v55 = vpop.f32.mrf.mxu1 }
 0x447   :  { %v2466_v56 = vadd.f32 %v2773_v53, %v2465_v55 }
 0x448   :  { %v2831_v57 = vpop.f32.mrf.mxu1 }
 0x449   :  { %2472 = vst [vmem:[#allocation13] sm:$0xff] %v2466_v56 }
 0x44a   :  { %v2468_v58 = vpop.f32.mrf.mxu1 }
 0x44b   :  { %v2469_v59 = vadd.f32 %v2773_v53, %v2468_v58 }
 0x44c   :  { %v2832_v60 = vpop.f32.mrf.mxu1 }
 0x44d   :  { %2473 = vst [vmem:[#allocation13 + $0x8] sm:$0xff] %v2469_v59 }
 0x44e   :  { %3396 = shalt.err (!%p3393_p6)
}
 0x44f   :  { %2485 = dma.vmem_to_hbm [thread:$0]  %s2480_s27, 256, %s3574_s9, [#allocation4], %s3419_s19, %s3419_s19, %s3420_s20  }
 0x450   :  { %3413 = dma.done.wait [#allocation4], 256  }
 0x451   :  { %3414 = vsyncadd [#allocation4], 4294967040 }
 0x452   :  { %2489 = vsyncpa [#allocation3], 1 }
 0x453   :  { %2490 = vsyncpa [#allocation6], 1 }
 0x454   :  { %2491 = vsyncpa [#allocation9], 1 }
 0x455   :  { %2492 = vsyncpa [#allocation12], 1 }
 0x456   :  { %2493 = vsyncpa [#allocation4], 1 }

</bundles_post_ra>
